<compile_context>
chip_gen: v6e
topology: v6e:2x2x1
jax: 0.10.0
libtpu: 0.0.40
codegen_flags: <defaults>
</compile_context>

<pallas_src>
import functools

import jax
import jax.numpy as jnp
import numpy as np
from jax.experimental import pallas as pl
from jax.experimental.pallas import tpu as pltpu


# --------------------------------- kernel ---------------------------------

def _ssh_kernel(mask_ref, x_ref, wa_ref, ba_ref, wb_ref, bb_ref, wc_ref, bc_ref,
                o_ref, xtap_ref, ytap_ref, *, W, co1_p, cq_p, leaky):
    """One batch-block of SSH.

    mask_ref : (8, L) f32 {0,1} validity masks for the 8 non-center taps
               (dy-major / dx-minor order), shared by every grid step.
    x_ref    : (Cin_p, L) input block; channels on sublanes, nb*H*W on lanes.
    wa_ref   : (co1_p+cq_p, 9*Cin_p) fused {conv3X3, conv5X5_1} weights.
    wb_ref   : (2*cq_p,     9*cq_p)  fused {conv5X5_2, conv7X7_2} weights.
    wc_ref   : (cq_p,       9*cq_p)  conv7x7_3 weights.
    b*_ref   : (rows, 1) f32 BN-folded biases.
    o_ref    : (co1_p + 2*cq_p, L) output block.
    xtap_ref : (9*Cin_p, L) VMEM scratch for stacked x taps (MXU K operand).
    ytap_ref : (9*cq_p, L)  VMEM scratch, reused for y51 taps then y72 taps.
    """
    L = x_ref.shape[1]
    masks = mask_ref[...]        # hoisted: computed on host, loaded once per step

    def fill_taps(v, dst_ref):
        """Write the 9 masked, shifted 3x3 taps of v into dst_ref (stacked K)."""
        C = v.shape[0]
        m = 0
        t = 0
        for dy in (-1, 0, 1):
            for dx in (-1, 0, 1):
                s = dy * W + dx
                tap = v if s == 0 else pltpu.roll(v, shift=(L - s) % L, axis=1)
                if not (dy == 0 and dx == 0):
                    tap = tap * masks[m:m + 1, :]     # mask in f32, then cast
                    m += 1
                dst_ref[t * C:(t + 1) * C, :] = tap.astype(dst_ref.dtype)
                t += 1

    def lrelu(v):
        return jnp.where(v >= 0.0, v, leaky * v)

    # stage 1: {conv3X3, conv5X5_1} share x's taps -> one fused matmul
    x = x_ref[...].astype(jnp.float32)
    fill_taps(x, xtap_ref)
    z1 = jnp.dot(wa_ref[...], xtap_ref[...],
                 preferred_element_type=jnp.float32) + ba_ref[...]
    o_ref[0:co1_p, :] = jnp.maximum(z1[0:co1_p, :], 0.0).astype(o_ref.dtype)
    y51 = lrelu(z1[co1_p:, :])

    # stage 2: {conv5X5_2, conv7X7_2} share y51's taps -> one fused matmul
    fill_taps(y51, ytap_ref)
    z2 = jnp.dot(wb_ref[...], ytap_ref[...],
                 preferred_element_type=jnp.float32) + bb_ref[...]
    o_ref[co1_p:co1_p + cq_p, :] = jnp.maximum(z2[0:cq_p, :],
                                               0.0).astype(o_ref.dtype)
    y72 = lrelu(z2[cq_p:, :])

    # stage 3: conv7x7_3 (y-tap scratch reused)
    fill_taps(y72, ytap_ref)
    z3 = jnp.dot(wc_ref[...], ytap_ref[...],
                 preferred_element_type=jnp.float32) + bc_ref[...]
    o_ref[co1_p + cq_p:co1_p + 2 * cq_p, :] = jnp.maximum(
        z3, 0.0).astype(o_ref.dtype)


# ----------------------------- host-side helpers -----------------------------

def _round_up(v, m):
    return (v + m - 1) // m * m


def _num_tensorcores():
    """Best-effort TensorCore count per device (v7x megacore); defaults to 1."""
    try:
        info = pltpu.get_tpu_info()
        for name in ("num_cores", "core_count", "num_tensorcores",
                     "tensorcore_count"):
            v = getattr(info, name, None)
            if isinstance(v, int) and 0 < v <= 8:
                return v
    except Exception:
        pass
    return 1


def _vmem_config():
    """(vmem_limit_bytes for CompilerParams, per-step activation budget)."""
    phys = 128 << 20
    try:
        phys = int(pltpu.get_tpu_info().vmem_capacity_bytes)
    except Exception:
        pass
    vmem_limit = max(32 << 20, min(phys - (16 << 20), 100 << 20))
    return vmem_limit, int(vmem_limit * 0.7)


def _step_footprint_bytes(L, Cin_p, co1_p, cq_p, cdt_bytes):
    """Conservative per-grid-step VMEM footprint."""
    Cout_p = co1_p + 2 * cq_p
    blocks = 2 * (Cin_p + Cout_p + 8) * L * 4    # in / out / mask, double buffered
    taps = 9 * (Cin_p + cq_p) * L * cdt_bytes    # xtap + (reused) ytap scratch
    inter = (Cin_p + co1_p + 6 * cq_p) * L * 4   # x, z1, y51, z2, y72, z3 (f32)
    return blocks + taps + inter


def _pick_batch_block(N, HW, Cin_p, co1_p, cq_p, cdt_bytes, budget, n_cores):
    """Images per grid step: the biggest lane-dense block that fits the VMEM
    budget, preferring a step count that balances across TensorCores."""
    best = None
    for nb in range(1, N + 1):
        if N % nb:
            continue
        L = _round_up(nb * HW, 128)
        if _step_footprint_bytes(L, Cin_p, co1_p, cq_p, cdt_bytes) > budget:
            continue
        G = N // nb
        key = (G % n_cores == 0, L)   # balanced over cores first, then big tiles
        if best is None or key > best[0]:
            best = (key, nb, L)
    if best is None:
        # TODO(synk): add a haloed spatial (row) tiling grid axis for feature
        # maps where even a single image blows the per-step VMEM budget.
        return 1, _round_up(HW, 128)
    return best[1], best[2]


def _tap_masks(H, W, nb, L):
    """(8, L) f32 {0,1} validity masks for the 8 non-center taps; zero on the
    image borders (conv zero padding), batch-image boundaries and dead lanes."""
    HW = H * W
    lane = np.arange(L)
    real = lane < nb * HW
    pix = lane % HW
    h = pix // W
    w = pix % W
    rows = []
    for dy in (-1, 0, 1):
        for dx in (-1, 0, 1):
            if dy == 0 and dx == 0:
                continue
            m = real.copy()
            if dx == -1:
                m = m & (w >= 1)
            elif dx == 1:
                m = m & (w <= W - 2)
            if dy == -1:
                m = m & (h >= 1)
            elif dy == 1:
                m = m & (h <= H - 2)
            rows.append(m)
    return jnp.asarray(np.stack(rows).astype(np.float32))


def _pad_oihw(w, o_p, i_p):
    o, i = w.shape[0], w.shape[1]
    return jnp.pad(w, ((0, o_p - o), (0, i_p - i), (0, 0), (0, 0)))


def _pad_vec(b, n):
    return jnp.pad(b, (0, n - b.shape[0]))


def _fuse_w(w):
    """(O, I, 3, 3) -> (O, 9*I); column t*I + ci matches stacked-tap row order
    (t = (dy+1)*3 + (dx+1))."""
    o, i = w.shape[0], w.shape[1]
    return jnp.transpose(w, (0, 2, 3, 1)).reshape(o, 9 * i)


def ssh_pallas(x, w3, b3, w51, b51, w52, b52, w72, b72, w73, b73,
               *, out_planes, leaky, compute_dtype=jnp.bfloat16):
    """x: (N, Cin, H, W) f32; w*: (O, I, 3, 3) BN-folded; b*: (O,) BN-folded.
    compute_dtype: dtype of the MXU operands (accumulation is always f32)."""
    N, Cin, H, W = x.shape
    HW = H * W
    co1, cq = out_planes // 2, out_planes // 4

    SUB = 16                                      # bf16 sublane-tile granularity
    Cin_p, co1_p, cq_p = (_round_up(c, SUB) for c in (Cin, co1, cq))
    Cout_p = co1_p + 2 * cq_p

    cdt_bytes = jnp.dtype(compute_dtype).itemsize
    vmem_limit, budget = _vmem_config()
    nb, L = _pick_batch_block(N, HW, Cin_p, co1_p, cq_p, cdt_bytes, budget,
                              _num_tensorcores())
    G = N // nb

    # channels -> sublanes; batch folded into lanes; pad channels to SUB and
    # per-block lanes to a 128 multiple (dead lanes are masked & sliced off).
    # TODO(synk): in a full network keep this channel-major layout between
    # layers to avoid the NCHW <-> (C, N*H*W) HBM round trips on every module.
    x_cl = jnp.transpose(x, (1, 0, 2, 3)).reshape(Cin, G, nb * HW)
    x_cl = jnp.pad(x_cl, ((0, Cin_p - Cin), (0, 0), (0, L - nb * HW)))
    x_flat = x_cl.reshape(Cin_p, G * L)

    masks = _tap_masks(H, W, nb, L)

    # branch-fused (M axis) + tap-fused (K axis) weights, cast to MXU dtype
    wa = _fuse_w(jnp.concatenate([_pad_oihw(w3, co1_p, Cin_p),
                                  _pad_oihw(w51, cq_p, Cin_p)], axis=0))
    wb = _fuse_w(jnp.concatenate([_pad_oihw(w52, cq_p, cq_p),
                                  _pad_oihw(w72, cq_p, cq_p)], axis=0))
    wc = _fuse_w(_pad_oihw(w73, cq_p, cq_p))
    wa, wb, wc = (w.astype(compute_dtype) for w in (wa, wb, wc))
    ba = jnp.concatenate([_pad_vec(b3, co1_p), _pad_vec(b51, cq_p)]).reshape(-1, 1)
    bb = jnp.concatenate([_pad_vec(b52, cq_p), _pad_vec(b72, cq_p)]).reshape(-1, 1)
    bc = _pad_vec(b73, cq_p).reshape(-1, 1)

    kernel = functools.partial(_ssh_kernel, W=W, co1_p=co1_p, cq_p=cq_p,
                               leaky=leaky)

    flops = 2 * 9 * N * HW * ((co1 + cq) * Cin + 3 * cq * cq)
    bytes_accessed = (x_flat.size + Cout_p * G * L + masks.size) * 4 \
        + (wa.size + wb.size + wc.size) * cdt_bytes

    out_flat = pl.pallas_call(
        kernel,
        out_shape=jax.ShapeDtypeStruct((Cout_p, G * L), x.dtype),
        grid=(G,),
        in_specs=[
            pl.BlockSpec((8, L), lambda i: (0, 0)),                      # masks
            pl.BlockSpec((Cin_p, L), lambda i: (0, i)),                  # x block
            pl.BlockSpec((co1_p + cq_p, 9 * Cin_p), lambda i: (0, 0)),   # wa
            pl.BlockSpec((co1_p + cq_p, 1), lambda i: (0, 0)),           # ba
            pl.BlockSpec((2 * cq_p, 9 * cq_p), lambda i: (0, 0)),        # wb
            pl.BlockSpec((2 * cq_p, 1), lambda i: (0, 0)),               # bb
            pl.BlockSpec((cq_p, 9 * cq_p), lambda i: (0, 0)),            # wc
            pl.BlockSpec((cq_p, 1), lambda i: (0, 0)),                   # bc
        ],
        out_specs=pl.BlockSpec((Cout_p, L), lambda i: (0, i)),
        scratch_shapes=[pltpu.VMEM((9 * Cin_p, L), compute_dtype),
                        pltpu.VMEM((9 * cq_p, L), compute_dtype)],
        compiler_params=pltpu.CompilerParams(
            dimension_semantics=("parallel",),
            vmem_limit_bytes=int(vmem_limit)),
        cost_estimate=pl.CostEstimate(flops=int(flops), transcendentals=0,
                                      bytes_accessed=int(bytes_accessed)),
    )(masks, x_flat, wa, ba, wb, bb, wc, bc)

    # drop dead lanes + padded channels, unfold batch, back to NCHW
    out = out_flat.reshape(Cout_p, G, L)[:, :, :nb * HW].reshape(Cout_p, N, H, W)
    out = jnp.concatenate([out[:co1],
                           out[co1_p:co1_p + cq],
                           out[co1_p + cq_p:co1_p + cq_p + cq]], axis=0)
    return jnp.transpose(out, (1, 0, 2, 3))


# ----------------------------- reference & setup -----------------------------

def _fold_bn(w, gamma, beta, mean, var, eps=1e-5):
    """Fold eval-mode BatchNorm into a bias-free conv: returns (w_eff, b_eff)."""
    scale = gamma / jnp.sqrt(var + eps)
    return w * scale[:, None, None, None], beta - mean * scale


def _make_conv_bn(key, cin, cout):
    k = jax.random.split(key, 5)
    w = jax.random.normal(k[0], (cout, cin, 3, 3), dtype=jnp.float32) * 0.3
    gamma = jax.random.uniform(k[1], (cout,), minval=0.5, maxval=1.5)
    beta = jax.random.normal(k[2], (cout,)) * 0.1
    mean = jax.random.normal(k[3], (cout,)) * 0.1
    var = jax.random.uniform(k[4], (cout,), minval=0.5, maxval=1.5)
    return _fold_bn(w, gamma, beta, mean, var)


def _conv3x3_ref(x, w, b):
    y = jax.lax.conv_general_dilated(
        x, w, window_strides=(1, 1), padding=((1, 1), (1, 1)),
        dimension_numbers=("NCHW", "OIHW", "NCHW"))
    return y + b.reshape(1, -1, 1, 1)


def _ssh_reference(x, w3, b3, w51, b51, w52, b52, w72, b72, w73, b73, *, leaky):
    def lrelu(v):
        return jnp.where(v >= 0.0, v, leaky * v)

    c3 = _conv3x3_ref(x, w3, b3)
    y51 = lrelu(_conv3x3_ref(x, w51, b51))
    c5 = _conv3x3_ref(y51, w52, b52)
    y72 = lrelu(_conv3x3_ref(y51, w72, b72))
    c7 = _conv3x3_ref(y72, w73, b73)
    return jax.nn.relu(jnp.concatenate([c3, c5, c7], axis=1))


if __name__ == "__main__":
    def run_case(N, Cin, H, W, out_planes, key):
        leaky = 0.1 if out_planes <= 64 else 0.0
        co1, cq = out_planes // 2, out_planes // 4
        kx, k3, k51, k52, k72, k73 = jax.random.split(key, 6)
        x = jax.random.normal(kx, (N, Cin, H, W), dtype=jnp.float32)
        w3, b3 = _make_conv_bn(k3, Cin, co1)       # conv3X3
        w51, b51 = _make_conv_bn(k51, Cin, cq)     # conv5X5_1 (+ leaky relu)
        w52, b52 = _make_conv_bn(k52, cq, cq)      # conv5X5_2
        w72, b72 = _make_conv_bn(k72, cq, cq)      # conv7X7_2 (+ leaky relu)
        w73, b73 = _make_conv_bn(k73, cq, cq)      # conv7x7_3
        args = (x, w3, b3, w51, b51, w52, b52, w72, b72, w73, b73)

        ref = _ssh_reference(*args, leaky=leaky)

        # exact-operand path (f32 on the MXU): tight tolerance
        out_f32 = jax.block_until_ready(
            ssh_pallas(*args, out_planes=out_planes, leaky=leaky,
                       compute_dtype=jnp.float32))
        assert out_f32.shape == (N, out_planes, H, W)
        err = float(jnp.max(jnp.abs(out_f32 - ref)))
        assert jnp.allclose(out_f32, ref, atol=1e-4, rtol=1e-4), err

        # perf path (bf16 MXU operands, f32 accumulation): relaxed tolerance
        out_bf = jax.block_until_ready(
            ssh_pallas(*args, out_planes=out_planes, leaky=leaky,
                       compute_dtype=jnp.bfloat16))
        rel = float(jnp.max(jnp.abs(out_bf - ref)) /
                    (float(jnp.max(jnp.abs(ref))) + 1e-6))
        assert rel < 5e-2, rel

    key = jax.random.PRNGKey(0)
    k1, k2 = jax.random.split(key)
    # SSH(in_planes=4, out_planes=8) on (2, 4, 16, 16): 128-aligned lanes.
    run_case(2, 4, 16, 16, 8, k1)
    # Odd spatial size (10x10): exercises the padded dead-lane path.
    run_case(2, 4, 10, 10, 8, k2)
    print("KERNEL_OK")
</pallas_src>

<mosaic_0001>
module attributes {stable_mosaic.version = 11 : i64} {
  func.func @_ssh_kernel(%arg0: i32, %arg1: memref<8x512xf32, #tpu.memory_space<vmem>>, %arg2: memref<16x512xf32, #tpu.memory_space<vmem>>, %arg3: memref<32x144xf32, #tpu.memory_space<vmem>>, %arg4: memref<32x1xf32, #tpu.memory_space<vmem>>, %arg5: memref<32x144xf32, #tpu.memory_space<vmem>>, %arg6: memref<32x1xf32, #tpu.memory_space<vmem>>, %arg7: memref<16x144xf32, #tpu.memory_space<vmem>>, %arg8: memref<16x1xf32, #tpu.memory_space<vmem>>, %arg9: memref<48x512xf32, #tpu.memory_space<vmem>>, %arg10: memref<144x512xf32, #tpu.memory_space<vmem>>, %arg11: memref<144x512xf32, #tpu.memory_space<vmem>>) attributes {dimension_semantics = [#tpu.dimension_semantics<parallel>], iteration_bounds = array<i64: 1>, scalar_prefetch = 0 : i64, scratch_operands = 2 : i64, tpu.core_type = #tpu.core_type<tc>, window_params = [{pipeline_mode = #tpu.pipeline_mode<synchronous>, transform_indices = @transform_0, window_bounds = array<i64: 8, 512>}, {transform_indices = @transform_1, window_bounds = array<i64: 16, 512>}, {pipeline_mode = #tpu.pipeline_mode<synchronous>, transform_indices = @transform_2, window_bounds = array<i64: 32, 144>}, {pipeline_mode = #tpu.pipeline_mode<synchronous>, transform_indices = @transform_3, window_bounds = array<i64: 32, 1>}, {pipeline_mode = #tpu.pipeline_mode<synchronous>, transform_indices = @transform_4, window_bounds = array<i64: 32, 144>}, {pipeline_mode = #tpu.pipeline_mode<synchronous>, transform_indices = @transform_5, window_bounds = array<i64: 32, 1>}, {pipeline_mode = #tpu.pipeline_mode<synchronous>, transform_indices = @transform_6, window_bounds = array<i64: 16, 144>}, {pipeline_mode = #tpu.pipeline_mode<synchronous>, transform_indices = @transform_7, window_bounds = array<i64: 16, 1>}, {transform_indices = @transform_8, window_bounds = array<i64: 48, 512>}]} {
    %c0 = arith.constant 0 : index
    %c0_0 = arith.constant 0 : index
    %0 = vector.load %arg1[%c0, %c0_0] : memref<8x512xf32, #tpu.memory_space<vmem>>, vector<8x512xf32>
    %c0_1 = arith.constant 0 : index
    %c0_2 = arith.constant 0 : index
    %1 = vector.load %arg2[%c0_1, %c0_2] : memref<16x512xf32, #tpu.memory_space<vmem>>, vector<16x512xf32>
    %c17_i32 = arith.constant 17 : i32
    %2 = tpu.dynamic_rotate %1 by %c17_i32 dim 1 : vector<16x512xf32>, i32 -> vector<16x512xf32>
    %3 = vector.extract_strided_slice %0 {offsets = [0, 0], sizes = [1, 512], strides = [1, 1]} : vector<8x512xf32> to vector<1x512xf32>
    %4 = vector.broadcast %3 : vector<1x512xf32> to vector<16x512xf32>
    %5 = arith.mulf %2, %4 : vector<16x512xf32>
    %c0_3 = arith.constant 0 : index
    %c0_4 = arith.constant 0 : index
    %6 = vector.load %arg10[%c0_3, %c0_4] : memref<144x512xf32, #tpu.memory_space<vmem>>, vector<16x512xf32>
    tpu.vector_store %arg10[%c0_3, %c0_4], %5 {strides = array<i32>} : memref<144x512xf32, #tpu.memory_space<vmem>>, vector<16x512xf32>,
    %c16_i32 = arith.constant 16 : i32
    %7 = tpu.dynamic_rotate %1 by %c16_i32 dim 1 : vector<16x512xf32>, i32 -> vector<16x512xf32>
    %8 = vector.extract_strided_slice %0 {offsets = [1, 0], sizes = [1, 512], strides = [1, 1]} : vector<8x512xf32> to vector<1x512xf32>
    %9 = vector.broadcast %8 : vector<1x512xf32> to vector<16x512xf32>
    %10 = arith.mulf %7, %9 : vector<16x512xf32>
    %c16 = arith.constant 16 : index
    %c0_5 = arith.constant 0 : index
    %11 = vector.load %arg10[%c16, %c0_5] : memref<144x512xf32, #tpu.memory_space<vmem>>, vector<16x512xf32>
    tpu.vector_store %arg10[%c16, %c0_5], %10 {strides = array<i32>} : memref<144x512xf32, #tpu.memory_space<vmem>>, vector<16x512xf32>,
    %c15_i32 = arith.constant 15 : i32
    %12 = tpu.dynamic_rotate %1 by %c15_i32 dim 1 : vector<16x512xf32>, i32 -> vector<16x512xf32>
    %13 = vector.extract_strided_slice %0 {offsets = [2, 0], sizes = [1, 512], strides = [1, 1]} : vector<8x512xf32> to vector<1x512xf32>
    %14 = vector.broadcast %13 : vector<1x512xf32> to vector<16x512xf32>
    %15 = arith.mulf %12, %14 : vector<16x512xf32>
    %c32 = arith.constant 32 : index
    %c0_6 = arith.constant 0 : index
    %16 = vector.load %arg10[%c32, %c0_6] : memref<144x512xf32, #tpu.memory_space<vmem>>, vector<16x512xf32>
    tpu.vector_store %arg10[%c32, %c0_6], %15 {strides = array<i32>} : memref<144x512xf32, #tpu.memory_space<vmem>>, vector<16x512xf32>,
    %c1_i32 = arith.constant 1 : i32
    %17 = tpu.dynamic_rotate %1 by %c1_i32 dim 1 : vector<16x512xf32>, i32 -> vector<16x512xf32>
    %18 = vector.extract_strided_slice %0 {offsets = [3, 0], sizes = [1, 512], strides = [1, 1]} : vector<8x512xf32> to vector<1x512xf32>
    %19 = vector.broadcast %18 : vector<1x512xf32> to vector<16x512xf32>
    %20 = arith.mulf %17, %19 : vector<16x512xf32>
    %c48 = arith.constant 48 : index
    %c0_7 = arith.constant 0 : index
    %21 = vector.load %arg10[%c48, %c0_7] : memref<144x512xf32, #tpu.memory_space<vmem>>, vector<16x512xf32>
    tpu.vector_store %arg10[%c48, %c0_7], %20 {strides = array<i32>} : memref<144x512xf32, #tpu.memory_space<vmem>>, vector<16x512xf32>,
    %c64 = arith.constant 64 : index
    %c0_8 = arith.constant 0 : index
    %22 = vector.load %arg10[%c64, %c0_8] : memref<144x512xf32, #tpu.memory_space<vmem>>, vector<16x512xf32>
    tpu.vector_store %arg10[%c64, %c0_8], %1 {strides = array<i32>} : memref<144x512xf32, #tpu.memory_space<vmem>>, vector<16x512xf32>,
    %c511_i32 = arith.constant 511 : i32
    %23 = tpu.dynamic_rotate %1 by %c511_i32 dim 1 : vector<16x512xf32>, i32 -> vector<16x512xf32>
    %24 = vector.extract_strided_slice %0 {offsets = [4, 0], sizes = [1, 512], strides = [1, 1]} : vector<8x512xf32> to vector<1x512xf32>
    %25 = vector.broadcast %24 : vector<1x512xf32> to vector<16x512xf32>
    %26 = arith.mulf %23, %25 : vector<16x512xf32>
    %c80 = arith.constant 80 : index
    %c0_9 = arith.constant 0 : index
    %27 = vector.load %arg10[%c80, %c0_9] : memref<144x512xf32, #tpu.memory_space<vmem>>, vector<16x512xf32>
    tpu.vector_store %arg10[%c80, %c0_9], %26 {strides = array<i32>} : memref<144x512xf32, #tpu.memory_space<vmem>>, vector<16x512xf32>,
    %c497_i32 = arith.constant 497 : i32
    %28 = tpu.dynamic_rotate %1 by %c497_i32 dim 1 : vector<16x512xf32>, i32 -> vector<16x512xf32>
    %29 = vector.extract_strided_slice %0 {offsets = [5, 0], sizes = [1, 512], strides = [1, 1]} : vector<8x512xf32> to vector<1x512xf32>
    %30 = vector.broadcast %29 : vector<1x512xf32> to vector<16x512xf32>
    %31 = arith.mulf %28, %30 : vector<16x512xf32>
    %c96 = arith.constant 96 : index
    %c0_10 = arith.constant 0 : index
    %32 = vector.load %arg10[%c96, %c0_10] : memref<144x512xf32, #tpu.memory_space<vmem>>, vector<16x512xf32>
    tpu.vector_store %arg10[%c96, %c0_10], %31 {strides = array<i32>} : memref<144x512xf32, #tpu.memory_space<vmem>>, vector<16x512xf32>,
    %c496_i32 = arith.constant 496 : i32
    %33 = tpu.dynamic_rotate %1 by %c496_i32 dim 1 : vector<16x512xf32>, i32 -> vector<16x512xf32>
    %34 = vector.extract_strided_slice %0 {offsets = [6, 0], sizes = [1, 512], strides = [1, 1]} : vector<8x512xf32> to vector<1x512xf32>
    %35 = vector.broadcast %34 : vector<1x512xf32> to vector<16x512xf32>
    %36 = arith.mulf %33, %35 : vector<16x512xf32>
    %c112 = arith.constant 112 : index
    %c0_11 = arith.constant 0 : index
    %37 = vector.load %arg10[%c112, %c0_11] : memref<144x512xf32, #tpu.memory_space<vmem>>, vector<16x512xf32>
    tpu.vector_store %arg10[%c112, %c0_11], %36 {strides = array<i32>} : memref<144x512xf32, #tpu.memory_space<vmem>>, vector<16x512xf32>,
    %c495_i32 = arith.constant 495 : i32
    %38 = tpu.dynamic_rotate %1 by %c495_i32 dim 1 : vector<16x512xf32>, i32 -> vector<16x512xf32>
    %39 = vector.extract_strided_slice %0 {offsets = [7, 0], sizes = [1, 512], strides = [1, 1]} : vector<8x512xf32> to vector<1x512xf32>
    %40 = vector.broadcast %39 : vector<1x512xf32> to vector<16x512xf32>
    %41 = arith.mulf %38, %40 : vector<16x512xf32>
    %c128 = arith.constant 128 : index
    %c0_12 = arith.constant 0 : index
    %42 = vector.load %arg10[%c128, %c0_12] : memref<144x512xf32, #tpu.memory_space<vmem>>, vector<16x512xf32>
    tpu.vector_store %arg10[%c128, %c0_12], %41 {strides = array<i32>} : memref<144x512xf32, #tpu.memory_space<vmem>>, vector<16x512xf32>,
    %c0_13 = arith.constant 0 : index
    %c0_14 = arith.constant 0 : index
    %43 = vector.load %arg3[%c0_13, %c0_14] : memref<32x144xf32, #tpu.memory_space<vmem>>, vector<32x144xf32>
    %c0_15 = arith.constant 0 : index
    %c0_16 = arith.constant 0 : index
    %44 = vector.load %arg10[%c0_15, %c0_16] : memref<144x512xf32, #tpu.memory_space<vmem>>, vector<144x512xf32>
    %cst = arith.constant dense<0.000000e+00> : vector<32x512xf32>
    %45 = tpu.matmul %43, %44, %cst {dimension_numbers = #tpu.dot_dimension_numbers<[1], [0], [0], [1], [0, 0, 1, 1], [], []>} : vector<32x144xf32>, vector<144x512xf32>, vector<32x512xf32> -> vector<32x512xf32>
    %c0_17 = arith.constant 0 : index
    %c0_18 = arith.constant 0 : index
    %46 = vector.load %arg4[%c0_17, %c0_18] : memref<32x1xf32, #tpu.memory_space<vmem>>, vector<32x1xf32>
    %47 = vector.broadcast %46 : vector<32x1xf32> to vector<32x512xf32>
    %48 = arith.addf %45, %47 : vector<32x512xf32>
    %49 = vector.extract_strided_slice %48 {offsets = [0, 0], sizes = [16, 512], strides = [1, 1]} : vector<32x512xf32> to vector<16x512xf32>
    %cst_19 = arith.constant 0.000000e+00 : f32
    %50 = vector.broadcast %cst_19 : f32 to vector<16x512xf32>
    %51 = arith.maximumf %49, %50 : vector<16x512xf32>
    %c0_20 = arith.constant 0 : index
    %c0_21 = arith.constant 0 : index
    %52 = vector.load %arg9[%c0_20, %c0_21] : memref<48x512xf32, #tpu.memory_space<vmem>>, vector<16x512xf32>
    tpu.vector_store %arg9[%c0_20, %c0_21], %51 {strides = array<i32>} : memref<48x512xf32, #tpu.memory_space<vmem>>, vector<16x512xf32>,
    %53 = vector.extract_strided_slice %48 {offsets = [16, 0], sizes = [16, 512], strides = [1, 1]} : vector<32x512xf32> to vector<16x512xf32>
    %cst_22 = arith.constant 0.000000e+00 : f32
    %54 = vector.broadcast %cst_22 : f32 to vector<16x512xf32>
    %55 = arith.cmpf oge, %53, %54 : vector<16x512xf32>
    %cst_23 = arith.constant 1.000000e-01 : f32
    %56 = vector.broadcast %cst_23 : f32 to vector<16x512xf32>
    %57 = arith.mulf %56, %53 : vector<16x512xf32>
    %58 = arith.select %55, %53, %57 : vector<16x512xi1>, vector<16x512xf32>
    %c17_i32_24 = arith.constant 17 : i32
    %59 = tpu.dynamic_rotate %58 by %c17_i32_24 dim 1 : vector<16x512xf32>, i32 -> vector<16x512xf32>
    %60 = vector.extract_strided_slice %0 {offsets = [0, 0], sizes = [1, 512], strides = [1, 1]} : vector<8x512xf32> to vector<1x512xf32>
    %61 = vector.broadcast %60 : vector<1x512xf32> to vector<16x512xf32>
    %62 = arith.mulf %59, %61 : vector<16x512xf32>
    %c0_25 = arith.constant 0 : index
    %c0_26 = arith.constant 0 : index
    %63 = vector.load %arg11[%c0_25, %c0_26] : memref<144x512xf32, #tpu.memory_space<vmem>>, vector<16x512xf32>
    tpu.vector_store %arg11[%c0_25, %c0_26], %62 {strides = array<i32>} : memref<144x512xf32, #tpu.memory_space<vmem>>, vector<16x512xf32>,
    %c16_i32_27 = arith.constant 16 : i32
    %64 = tpu.dynamic_rotate %58 by %c16_i32_27 dim 1 : vector<16x512xf32>, i32 -> vector<16x512xf32>
    %65 = vector.extract_strided_slice %0 {offsets = [1, 0], sizes = [1, 512], strides = [1, 1]} : vector<8x512xf32> to vector<1x512xf32>
    %66 = vector.broadcast %65 : vector<1x512xf32> to vector<16x512xf32>
    %67 = arith.mulf %64, %66 : vector<16x512xf32>
    %c16_28 = arith.constant 16 : index
    %c0_29 = arith.constant 0 : index
    %68 = vector.load %arg11[%c16_28, %c0_29] : memref<144x512xf32, #tpu.memory_space<vmem>>, vector<16x512xf32>
    tpu.vector_store %arg11[%c16_28, %c0_29], %67 {strides = array<i32>} : memref<144x512xf32, #tpu.memory_space<vmem>>, vector<16x512xf32>,
    %c15_i32_30 = arith.constant 15 : i32
    %69 = tpu.dynamic_rotate %58 by %c15_i32_30 dim 1 : vector<16x512xf32>, i32 -> vector<16x512xf32>
    %70 = vector.extract_strided_slice %0 {offsets = [2, 0], sizes = [1, 512], strides = [1, 1]} : vector<8x512xf32> to vector<1x512xf32>
    %71 = vector.broadcast %70 : vector<1x512xf32> to vector<16x512xf32>
    %72 = arith.mulf %69, %71 : vector<16x512xf32>
    %c32_31 = arith.constant 32 : index
    %c0_32 = arith.constant 0 : index
    %73 = vector.load %arg11[%c32_31, %c0_32] : memref<144x512xf32, #tpu.memory_space<vmem>>, vector<16x512xf32>
    tpu.vector_store %arg11[%c32_31, %c0_32], %72 {strides = array<i32>} : memref<144x512xf32, #tpu.memory_space<vmem>>, vector<16x512xf32>,
    %c1_i32_33 = arith.constant 1 : i32
    %74 = tpu.dynamic_rotate %58 by %c1_i32_33 dim 1 : vector<16x512xf32>, i32 -> vector<16x512xf32>
    %75 = vector.extract_strided_slice %0 {offsets = [3, 0], sizes = [1, 512], strides = [1, 1]} : vector<8x512xf32> to vector<1x512xf32>
    %76 = vector.broadcast %75 : vector<1x512xf32> to vector<16x512xf32>
    %77 = arith.mulf %74, %76 : vector<16x512xf32>
    %c48_34 = arith.constant 48 : index
    %c0_35 = arith.constant 0 : index
    %78 = vector.load %arg11[%c48_34, %c0_35] : memref<144x512xf32, #tpu.memory_space<vmem>>, vector<16x512xf32>
    tpu.vector_store %arg11[%c48_34, %c0_35], %77 {strides = array<i32>} : memref<144x512xf32, #tpu.memory_space<vmem>>, vector<16x512xf32>,
    %c64_36 = arith.constant 64 : index
    %c0_37 = arith.constant 0 : index
    %79 = vector.load %arg11[%c64_36, %c0_37] : memref<144x512xf32, #tpu.memory_space<vmem>>, vector<16x512xf32>
    tpu.vector_store %arg11[%c64_36, %c0_37], %58 {strides = array<i32>} : memref<144x512xf32, #tpu.memory_space<vmem>>, vector<16x512xf32>,
    %c511_i32_38 = arith.constant 511 : i32
    %80 = tpu.dynamic_rotate %58 by %c511_i32_38 dim 1 : vector<16x512xf32>, i32 -> vector<16x512xf32>
    %81 = vector.extract_strided_slice %0 {offsets = [4, 0], sizes = [1, 512], strides = [1, 1]} : vector<8x512xf32> to vector<1x512xf32>
    %82 = vector.broadcast %81 : vector<1x512xf32> to vector<16x512xf32>
    %83 = arith.mulf %80, %82 : vector<16x512xf32>
    %c80_39 = arith.constant 80 : index
    %c0_40 = arith.constant 0 : index
    %84 = vector.load %arg11[%c80_39, %c0_40] : memref<144x512xf32, #tpu.memory_space<vmem>>, vector<16x512xf32>
    tpu.vector_store %arg11[%c80_39, %c0_40], %83 {strides = array<i32>} : memref<144x512xf32, #tpu.memory_space<vmem>>, vector<16x512xf32>,
    %c497_i32_41 = arith.constant 497 : i32
    %85 = tpu.dynamic_rotate %58 by %c497_i32_41 dim 1 : vector<16x512xf32>, i32 -> vector<16x512xf32>
    %86 = vector.extract_strided_slice %0 {offsets = [5, 0], sizes = [1, 512], strides = [1, 1]} : vector<8x512xf32> to vector<1x512xf32>
    %87 = vector.broadcast %86 : vector<1x512xf32> to vector<16x512xf32>
    %88 = arith.mulf %85, %87 : vector<16x512xf32>
    %c96_42 = arith.constant 96 : index
    %c0_43 = arith.constant 0 : index
    %89 = vector.load %arg11[%c96_42, %c0_43] : memref<144x512xf32, #tpu.memory_space<vmem>>, vector<16x512xf32>
    tpu.vector_store %arg11[%c96_42, %c0_43], %88 {strides = array<i32>} : memref<144x512xf32, #tpu.memory_space<vmem>>, vector<16x512xf32>,
    %c496_i32_44 = arith.constant 496 : i32
    %90 = tpu.dynamic_rotate %58 by %c496_i32_44 dim 1 : vector<16x512xf32>, i32 -> vector<16x512xf32>
    %91 = vector.extract_strided_slice %0 {offsets = [6, 0], sizes = [1, 512], strides = [1, 1]} : vector<8x512xf32> to vector<1x512xf32>
    %92 = vector.broadcast %91 : vector<1x512xf32> to vector<16x512xf32>
    %93 = arith.mulf %90, %92 : vector<16x512xf32>
    %c112_45 = arith.constant 112 : index
    %c0_46 = arith.constant 0 : index
    %94 = vector.load %arg11[%c112_45, %c0_46] : memref<144x512xf32, #tpu.memory_space<vmem>>, vector<16x512xf32>
    tpu.vector_store %arg11[%c112_45, %c0_46], %93 {strides = array<i32>} : memref<144x512xf32, #tpu.memory_space<vmem>>, vector<16x512xf32>,
    %c495_i32_47 = arith.constant 495 : i32
    %95 = tpu.dynamic_rotate %58 by %c495_i32_47 dim 1 : vector<16x512xf32>, i32 -> vector<16x512xf32>
    %96 = vector.extract_strided_slice %0 {offsets = [7, 0], sizes = [1, 512], strides = [1, 1]} : vector<8x512xf32> to vector<1x512xf32>
    %97 = vector.broadcast %96 : vector<1x512xf32> to vector<16x512xf32>
    %98 = arith.mulf %95, %97 : vector<16x512xf32>
    %c128_48 = arith.constant 128 : index
    %c0_49 = arith.constant 0 : index
    %99 = vector.load %arg11[%c128_48, %c0_49] : memref<144x512xf32, #tpu.memory_space<vmem>>, vector<16x512xf32>
    tpu.vector_store %arg11[%c128_48, %c0_49], %98 {strides = array<i32>} : memref<144x512xf32, #tpu.memory_space<vmem>>, vector<16x512xf32>,
    %c0_50 = arith.constant 0 : index
    %c0_51 = arith.constant 0 : index
    %100 = vector.load %arg5[%c0_50, %c0_51] : memref<32x144xf32, #tpu.memory_space<vmem>>, vector<32x144xf32>
    %c0_52 = arith.constant 0 : index
    %c0_53 = arith.constant 0 : index
    %101 = vector.load %arg11[%c0_52, %c0_53] : memref<144x512xf32, #tpu.memory_space<vmem>>, vector<144x512xf32>
    %cst_54 = arith.constant dense<0.000000e+00> : vector<32x512xf32>
    %102 = tpu.matmul %100, %101, %cst_54 {dimension_numbers = #tpu.dot_dimension_numbers<[1], [0], [0], [1], [0, 0, 1, 1], [], []>} : vector<32x144xf32>, vector<144x512xf32>, vector<32x512xf32> -> vector<32x512xf32>
    %c0_55 = arith.constant 0 : index
    %c0_56 = arith.constant 0 : index
    %103 = vector.load %arg6[%c0_55, %c0_56] : memref<32x1xf32, #tpu.memory_space<vmem>>, vector<32x1xf32>
    %104 = vector.broadcast %103 : vector<32x1xf32> to vector<32x512xf32>
    %105 = arith.addf %102, %104 : vector<32x512xf32>
    %106 = vector.extract_strided_slice %105 {offsets = [0, 0], sizes = [16, 512], strides = [1, 1]} : vector<32x512xf32> to vector<16x512xf32>
    %cst_57 = arith.constant 0.000000e+00 : f32
    %107 = vector.broadcast %cst_57 : f32 to vector<16x512xf32>
    %108 = arith.maximumf %106, %107 : vector<16x512xf32>
    %c16_58 = arith.constant 16 : index
    %c0_59 = arith.constant 0 : index
    %109 = vector.load %arg9[%c16_58, %c0_59] : memref<48x512xf32, #tpu.memory_space<vmem>>, vector<16x512xf32>
    tpu.vector_store %arg9[%c16_58, %c0_59], %108 {strides = array<i32>} : memref<48x512xf32, #tpu.memory_space<vmem>>, vector<16x512xf32>,
    %110 = vector.extract_strided_slice %105 {offsets = [16, 0], sizes = [16, 512], strides = [1, 1]} : vector<32x512xf32> to vector<16x512xf32>
    %cst_60 = arith.constant 0.000000e+00 : f32
    %111 = vector.broadcast %cst_60 : f32 to vector<16x512xf32>
    %112 = arith.cmpf oge, %110, %111 : vector<16x512xf32>
    %cst_61 = arith.constant 1.000000e-01 : f32
    %113 = vector.broadcast %cst_61 : f32 to vector<16x512xf32>
    %114 = arith.mulf %113, %110 : vector<16x512xf32>
    %115 = arith.select %112, %110, %114 : vector<16x512xi1>, vector<16x512xf32>
    %c17_i32_62 = arith.constant 17 : i32
    %116 = tpu.dynamic_rotate %115 by %c17_i32_62 dim 1 : vector<16x512xf32>, i32 -> vector<16x512xf32>
    %117 = vector.extract_strided_slice %0 {offsets = [0, 0], sizes = [1, 512], strides = [1, 1]} : vector<8x512xf32> to vector<1x512xf32>
    %118 = vector.broadcast %117 : vector<1x512xf32> to vector<16x512xf32>
    %119 = arith.mulf %116, %118 : vector<16x512xf32>
    %c0_63 = arith.constant 0 : index
    %c0_64 = arith.constant 0 : index
    %120 = vector.load %arg11[%c0_63, %c0_64] : memref<144x512xf32, #tpu.memory_space<vmem>>, vector<16x512xf32>
    tpu.vector_store %arg11[%c0_63, %c0_64], %119 {strides = array<i32>} : memref<144x512xf32, #tpu.memory_space<vmem>>, vector<16x512xf32>,
    %c16_i32_65 = arith.constant 16 : i32
    %121 = tpu.dynamic_rotate %115 by %c16_i32_65 dim 1 : vector<16x512xf32>, i32 -> vector<16x512xf32>
    %122 = vector.extract_strided_slice %0 {offsets = [1, 0], sizes = [1, 512], strides = [1, 1]} : vector<8x512xf32> to vector<1x512xf32>
    %123 = vector.broadcast %122 : vector<1x512xf32> to vector<16x512xf32>
    %124 = arith.mulf %121, %123 : vector<16x512xf32>
    %c16_66 = arith.constant 16 : index
    %c0_67 = arith.constant 0 : index
    %125 = vector.load %arg11[%c16_66, %c0_67] : memref<144x512xf32, #tpu.memory_space<vmem>>, vector<16x512xf32>
    tpu.vector_store %arg11[%c16_66, %c0_67], %124 {strides = array<i32>} : memref<144x512xf32, #tpu.memory_space<vmem>>, vector<16x512xf32>,
    %c15_i32_68 = arith.constant 15 : i32
    %126 = tpu.dynamic_rotate %115 by %c15_i32_68 dim 1 : vector<16x512xf32>, i32 -> vector<16x512xf32>
    %127 = vector.extract_strided_slice %0 {offsets = [2, 0], sizes = [1, 512], strides = [1, 1]} : vector<8x512xf32> to vector<1x512xf32>
    %128 = vector.broadcast %127 : vector<1x512xf32> to vector<16x512xf32>
    %129 = arith.mulf %126, %128 : vector<16x512xf32>
    %c32_69 = arith.constant 32 : index
    %c0_70 = arith.constant 0 : index
    %130 = vector.load %arg11[%c32_69, %c0_70] : memref<144x512xf32, #tpu.memory_space<vmem>>, vector<16x512xf32>
    tpu.vector_store %arg11[%c32_69, %c0_70], %129 {strides = array<i32>} : memref<144x512xf32, #tpu.memory_space<vmem>>, vector<16x512xf32>,
    %c1_i32_71 = arith.constant 1 : i32
    %131 = tpu.dynamic_rotate %115 by %c1_i32_71 dim 1 : vector<16x512xf32>, i32 -> vector<16x512xf32>
    %132 = vector.extract_strided_slice %0 {offsets = [3, 0], sizes = [1, 512], strides = [1, 1]} : vector<8x512xf32> to vector<1x512xf32>
    %133 = vector.broadcast %132 : vector<1x512xf32> to vector<16x512xf32>
    %134 = arith.mulf %131, %133 : vector<16x512xf32>
    %c48_72 = arith.constant 48 : index
    %c0_73 = arith.constant 0 : index
    %135 = vector.load %arg11[%c48_72, %c0_73] : memref<144x512xf32, #tpu.memory_space<vmem>>, vector<16x512xf32>
    tpu.vector_store %arg11[%c48_72, %c0_73], %134 {strides = array<i32>} : memref<144x512xf32, #tpu.memory_space<vmem>>, vector<16x512xf32>,
    %c64_74 = arith.constant 64 : index
    %c0_75 = arith.constant 0 : index
    %136 = vector.load %arg11[%c64_74, %c0_75] : memref<144x512xf32, #tpu.memory_space<vmem>>, vector<16x512xf32>
    tpu.vector_store %arg11[%c64_74, %c0_75], %115 {strides = array<i32>} : memref<144x512xf32, #tpu.memory_space<vmem>>, vector<16x512xf32>,
    %c511_i32_76 = arith.constant 511 : i32
    %137 = tpu.dynamic_rotate %115 by %c511_i32_76 dim 1 : vector<16x512xf32>, i32 -> vector<16x512xf32>
    %138 = vector.extract_strided_slice %0 {offsets = [4, 0], sizes = [1, 512], strides = [1, 1]} : vector<8x512xf32> to vector<1x512xf32>
    %139 = vector.broadcast %138 : vector<1x512xf32> to vector<16x512xf32>
    %140 = arith.mulf %137, %139 : vector<16x512xf32>
    %c80_77 = arith.constant 80 : index
    %c0_78 = arith.constant 0 : index
    %141 = vector.load %arg11[%c80_77, %c0_78] : memref<144x512xf32, #tpu.memory_space<vmem>>, vector<16x512xf32>
    tpu.vector_store %arg11[%c80_77, %c0_78], %140 {strides = array<i32>} : memref<144x512xf32, #tpu.memory_space<vmem>>, vector<16x512xf32>,
    %c497_i32_79 = arith.constant 497 : i32
    %142 = tpu.dynamic_rotate %115 by %c497_i32_79 dim 1 : vector<16x512xf32>, i32 -> vector<16x512xf32>
    %143 = vector.extract_strided_slice %0 {offsets = [5, 0], sizes = [1, 512], strides = [1, 1]} : vector<8x512xf32> to vector<1x512xf32>
    %144 = vector.broadcast %143 : vector<1x512xf32> to vector<16x512xf32>
    %145 = arith.mulf %142, %144 : vector<16x512xf32>
    %c96_80 = arith.constant 96 : index
    %c0_81 = arith.constant 0 : index
    %146 = vector.load %arg11[%c96_80, %c0_81] : memref<144x512xf32, #tpu.memory_space<vmem>>, vector<16x512xf32>
    tpu.vector_store %arg11[%c96_80, %c0_81], %145 {strides = array<i32>} : memref<144x512xf32, #tpu.memory_space<vmem>>, vector<16x512xf32>,
    %c496_i32_82 = arith.constant 496 : i32
    %147 = tpu.dynamic_rotate %115 by %c496_i32_82 dim 1 : vector<16x512xf32>, i32 -> vector<16x512xf32>
    %148 = vector.extract_strided_slice %0 {offsets = [6, 0], sizes = [1, 512], strides = [1, 1]} : vector<8x512xf32> to vector<1x512xf32>
    %149 = vector.broadcast %148 : vector<1x512xf32> to vector<16x512xf32>
    %150 = arith.mulf %147, %149 : vector<16x512xf32>
    %c112_83 = arith.constant 112 : index
    %c0_84 = arith.constant 0 : index
    %151 = vector.load %arg11[%c112_83, %c0_84] : memref<144x512xf32, #tpu.memory_space<vmem>>, vector<16x512xf32>
    tpu.vector_store %arg11[%c112_83, %c0_84], %150 {strides = array<i32>} : memref<144x512xf32, #tpu.memory_space<vmem>>, vector<16x512xf32>,
    %c495_i32_85 = arith.constant 495 : i32
    %152 = tpu.dynamic_rotate %115 by %c495_i32_85 dim 1 : vector<16x512xf32>, i32 -> vector<16x512xf32>
    %153 = vector.extract_strided_slice %0 {offsets = [7, 0], sizes = [1, 512], strides = [1, 1]} : vector<8x512xf32> to vector<1x512xf32>
    %154 = vector.broadcast %153 : vector<1x512xf32> to vector<16x512xf32>
    %155 = arith.mulf %152, %154 : vector<16x512xf32>
    %c128_86 = arith.constant 128 : index
    %c0_87 = arith.constant 0 : index
    %156 = vector.load %arg11[%c128_86, %c0_87] : memref<144x512xf32, #tpu.memory_space<vmem>>, vector<16x512xf32>
    tpu.vector_store %arg11[%c128_86, %c0_87], %155 {strides = array<i32>} : memref<144x512xf32, #tpu.memory_space<vmem>>, vector<16x512xf32>,
    %c0_88 = arith.constant 0 : index
    %c0_89 = arith.constant 0 : index
    %157 = vector.load %arg7[%c0_88, %c0_89] : memref<16x144xf32, #tpu.memory_space<vmem>>, vector<16x144xf32>
    %c0_90 = arith.constant 0 : index
    %c0_91 = arith.constant 0 : index
    %158 = vector.load %arg11[%c0_90, %c0_91] : memref<144x512xf32, #tpu.memory_space<vmem>>, vector<144x512xf32>
    %cst_92 = arith.constant dense<0.000000e+00> : vector<16x512xf32>
    %159 = tpu.matmul %157, %158, %cst_92 {dimension_numbers = #tpu.dot_dimension_numbers<[1], [0], [0], [1], [0, 0, 1, 1], [], []>} : vector<16x144xf32>, vector<144x512xf32>, vector<16x512xf32> -> vector<16x512xf32>
    %c0_93 = arith.constant 0 : index
    %c0_94 = arith.constant 0 : index
    %160 = vector.load %arg8[%c0_93, %c0_94] : memref<16x1xf32, #tpu.memory_space<vmem>>, vector<16x1xf32>
    %161 = vector.broadcast %160 : vector<16x1xf32> to vector<16x512xf32>
    %162 = arith.addf %159, %161 : vector<16x512xf32>
    %cst_95 = arith.constant 0.000000e+00 : f32
    %163 = vector.broadcast %cst_95 : f32 to vector<16x512xf32>
    %164 = arith.maximumf %162, %163 : vector<16x512xf32>
    %c32_96 = arith.constant 32 : index
    %c0_97 = arith.constant 0 : index
    %165 = vector.load %arg9[%c32_96, %c0_97] : memref<48x512xf32, #tpu.memory_space<vmem>>, vector<16x512xf32>
    tpu.vector_store %arg9[%c32_96, %c0_97], %164 {strides = array<i32>} : memref<48x512xf32, #tpu.memory_space<vmem>>, vector<16x512xf32>,
    return
  }
  func.func @transform_0(%arg0: i32) -> (i32, i32) {
    %c0_i32 = arith.constant 0 : i32
    %c0_i32_0 = arith.constant 0 : i32
    %c0_i32_1 = arith.constant 0 : i32
    return %c0_i32, %c0_i32_0 : i32, i32
  }
  func.func @transform_1(%arg0: i32) -> (i32, i32) {
    %c0_i32 = arith.constant 0 : i32
    %c0_i32_0 = arith.constant 0 : i32
    return %c0_i32, %arg0 : i32, i32
  }
  func.func @transform_2(%arg0: i32) -> (i32, i32) {
    %c0_i32 = arith.constant 0 : i32
    %c0_i32_0 = arith.constant 0 : i32
    %c0_i32_1 = arith.constant 0 : i32
    return %c0_i32, %c0_i32_0 : i32, i32
  }
  func.func @transform_3(%arg0: i32) -> (i32, i32) {
    %c0_i32 = arith.constant 0 : i32
    %c0_i32_0 = arith.constant 0 : i32
    %c0_i32_1 = arith.constant 0 : i32
    return %c0_i32, %c0_i32_0 : i32, i32
  }
  func.func @transform_4(%arg0: i32) -> (i32, i32) {
    %c0_i32 = arith.constant 0 : i32
    %c0_i32_0 = arith.constant 0 : i32
    %c0_i32_1 = arith.constant 0 : i32
    return %c0_i32, %c0_i32_0 : i32, i32
  }
  func.func @transform_5(%arg0: i32) -> (i32, i32) {
    %c0_i32 = arith.constant 0 : i32
    %c0_i32_0 = arith.constant 0 : i32
    %c0_i32_1 = arith.constant 0 : i32
    return %c0_i32, %c0_i32_0 : i32, i32
  }
  func.func @transform_6(%arg0: i32) -> (i32, i32) {
    %c0_i32 = arith.constant 0 : i32
    %c0_i32_0 = arith.constant 0 : i32
    %c0_i32_1 = arith.constant 0 : i32
    return %c0_i32, %c0_i32_0 : i32, i32
  }
  func.func @transform_7(%arg0: i32) -> (i32, i32) {
    %c0_i32 = arith.constant 0 : i32
    %c0_i32_0 = arith.constant 0 : i32
    %c0_i32_1 = arith.constant 0 : i32
    return %c0_i32, %c0_i32_0 : i32, i32
  }
  func.func @transform_8(%arg0: i32) -> (i32, i32) {
    %c0_i32 = arith.constant 0 : i32
    %c0_i32_0 = arith.constant 0 : i32
    return %c0_i32, %arg0 : i32, i32
  }
}

</mosaic_0001>

<bundles_post_ra>
// kernel: tpu_custom_call.1
= control target key start
LH: loop header
LB: loop body
LE: loop exit
PB: predicated region body
PF: predicated region fallthrough
CT: control target
= control target key end

     0   :  { %13 = vsyncpa [#allocation5], 0  ;;  %s3921_s0 = inlined_call_operand.hbm [shape: f32[8,512], index: 0, kind: input, shape index: {}]   ;;  %s3922_s1 = inlined_call_operand.vmem [shape: f32[16,512], index: 1, kind: input, shape index: {}]   ;;  %s3923_s2 = inlined_call_operand.hbm [shape: f32[32,144], index: 2, kind: input, shape index: {}]   ;;  %s3924_s3 = inlined_call_operand.vmem [shape: f32[32,1], index: 3, kind: input, shape index: {}]   ;;  %s3925_s4 = inlined_call_operand.hbm [shape: f32[32,144], index: 4, kind: input, shape index: {}]   ;;  %s3926_s5 = inlined_call_operand.vmem [shape: f32[32,1], index: 5, kind: input, shape index: {}]   ;;  %s3927_s6 = inlined_call_operand.hbm [shape: f32[16,144], index: 6, kind: input, shape index: {}]   ;;  %s3928_s7 = inlined_call_operand.vmem [shape: f32[16,1], index: 7, kind: input, shape index: {}]   ;;  %s3929_s8 = inlined_call_operand.hbm [shape: f32[48,512], index: 8, kind: output, shape index: {}]  }
   0x1   :  { %14 = vsyncpa [#allocation8], 0 }
   0x2   :  { %15 = vsyncpa [#allocation11], 0 }
   0x3   :  { %16 = vsyncpa [#allocation6], 0  ;;  %s2316_s27 = smov [#allocation7]  }
   0x4   :  { %s34_s28 = sshll.u32 %s2316_s27, 4  ;;  %s35_s28 = int_to_ptr.vmem [resolvable:$true] %s34_s28 }
   0x5   :  { %s2216_s29 = scalar_lea.vmem %s35_s28, 1024  ;;  %p2221_p1 = scmp.lt.s32.totalorder %s35_s28, %s35_s28 }
   0x6   :  { %p2217_p0 = scmp.ne.s32.totalorder %s35_s28, %s2216_s29  ;;  %p2222_p2 = scmp.lt.s32.totalorder %s2216_s29, %s2216_s29 }
   0x8   :  { %p2223_p3 = por %p2222_p2, %p2221_p1 }
   0xa   :  { %p2224_p4 = pnand %p2223_p3, %p2217_p0 }
   0xc   :  { %2227 = shalt.err (!%p2224_p4)
}
   0xd   :  { %s2317_s30 = smov 256   ;;  %s2318_s9 = smov 16  }
   0xe   :  { %40 = dma.hbm_to_vmem [thread:$0]  %s3923_s2, 1024, %s35_s28, [#allocation8], %s2317_s30, %s2317_s30, %s2318_s9  }
   0xf   :  { %s2319_s12 = smov [#allocation4]   ;;  %s2320_s14 = smov [#allocation9]  }
  0x10   :  { %s23_s13 = sshll.u32 %s2319_s12, 4  ;;  %s48_s15 = sshll.u32 %s2320_s14, 4  ;;  %s24_s13 = int_to_ptr.vmem [resolvable:$true] %s23_s13  ;;  %s49_s15 = int_to_ptr.vmem [resolvable:$true] %s48_s15 }
  0x11   :  { %s2236_s16 = scalar_lea.vmem %s24_s13, 512  ;;  %p2241_p6 = scmp.lt.s32.totalorder %s24_s13, %s24_s13 }
  0x12   :  { %p2237_p5 = scmp.ne.s32.totalorder %s24_s13, %s2236_s16  ;;  %p2242_p7 = scmp.lt.s32.totalorder %s2236_s16, %s2236_s16 }
  0x14   :  { %p2243_p8 = por %p2242_p7, %p2241_p6 }
  0x16   :  { %p2244_p9 = pnand %p2243_p8, %p2237_p5 }
  0x18   :  { %2247 = shalt.err (!%p2244_p9)
}
  0x19   :  { %26 = dma.hbm_to_vmem [thread:$0]  %s3921_s0, 512, %s24_s13, [#allocation5]  }
  0x1a   :  { %s2256_s19 = scalar_lea.vmem %s49_s15, 1024  ;;  %p2261_p11 = scmp.lt.s32.totalorder %s49_s15, %s49_s15 }
  0x1b   :  { %p2257_p10 = scmp.ne.s32.totalorder %s49_s15, %s2256_s19  ;;  %p2262_p12 = scmp.lt.s32.totalorder %s2256_s19, %s2256_s19 }
  0x1d   :  { %p2263_p13 = por %p2262_p12, %p2261_p11 }
  0x1f   :  { %p2264_p0 = pnand %p2263_p13, %p2257_p10 }
  0x21   :  { %2267 = shalt.err (!%p2264_p0)
}
  0x22   :  { %54 = dma.hbm_to_vmem [thread:$0]  %s3925_s4, 1024, %s49_s15, [#allocation8], %s2317_s30, %s2317_s30, %s2318_s9  }
  0x23   :  { %s2321_s21 = smov [#allocation10]  }
  0x24   :  { %s62_s22 = sshll.u32 %s2321_s21, 4  ;;  %s63_s22 = int_to_ptr.vmem [resolvable:$true] %s62_s22 }
  0x25   :  { %s2276_s23 = scalar_lea.vmem %s63_s22, 512  ;;  %p2281_p2 = scmp.lt.s32.totalorder %s63_s22, %s63_s22 }
  0x26   :  { %p2277_p1 = scmp.ne.s32.totalorder %s63_s22, %s2276_s23  ;;  %p2282_p3 = scmp.lt.s32.totalorder %s2276_s23, %s2276_s23 }
  0x28   :  { %p2283_p4 = por %p2282_p3, %p2281_p2 }
  0x2a   :  { %p2284_p5 = pnand %p2283_p4, %p2277_p1 }
  0x2c   :  { %2287 = shalt.err (!%p2284_p5)
}
  0x2d   :  { %68 = dma.hbm_to_vmem [thread:$0]  %s3927_s6, 512, %s63_s22, [#allocation11], %s2317_s30, %s2317_s30, %s2318_s9  }
  0x2e   :  { %2308 = dma.done.wait [#allocation5], 512  }
  0x2f   :  { %2309 = vsyncadd [#allocation5], 4294966784 }
  0x30   :  { %2310 = dma.done.wait [#allocation8], 2048  }
  0x31   :  { %2311 = vsyncadd [#allocation8], 4294965248 }
  0x32   :  { %2312 = dma.done.wait [#allocation11], 512  }
  0x33   :  { %2313 = vsyncadd [#allocation11], 4294966784  ;;  %v2402_v0 = vld [vmem:[%s3922_s1 + $0x30] sm:$0xff]  ;;  %v2407_v1 = vld [vmem:[%s3922_s1 + $0x20] sm:$0xff]  ;;  %s2322_s28 = smov 112   ;;  %s2323_s19 = smov 113   ;;  %v111_v8 = vlaneseq }
  0x34   :  { %457 = vrot.lane.b32.xlu1 %v2402_v0, %s2322_s28  ;;  %449 = vrot.lane.b32.xlu0 %v2407_v1, %s2322_s28  ;;  %v2416_v2 = vld [vmem:[%s3922_s1 + $0x38] sm:$0xff]  ;;  %v2421_v3 = vld [vmem:[%s3922_s1 + $0x28] sm:$0xff]  ;;  %s2325_s2 = smov 1   ;;  %s2326_s20 = smov 15   ;;  %v2564_v14 = vld [vmem:[#allocation4] sm:$0xff]  ;;  %vm665_vm0 = vcmask 130048  }
  0x35   :  { %v2430_v4 = vld [vmem:[%s3922_s1 + $0x8] sm:$0xff]  ;;  %v2435_v5 = vld [vmem:[%s3922_s1] sm:$0xff]  ;;  %v2444_v6 = vld [vmem:[%s3922_s1 + $0x18] sm:$0xff]  ;;  %s2327_s21 = smov 17   ;;  %v2551_v9 = vshrl.u32 %v111_v8, 7  ;;  %s2328_s22 = smov 111  }
  0x36   :  { %v2449_v7 = vld [vmem:[%s3922_s1 + $0x10] sm:$0xff]  ;;  %s2324_s1 = smov 127   ;;  %v2557_v10 = vand.u32 127, %v111_v8  ;;  %v2560_v12 = vld [vmem:[#allocation4 + $0x8] sm:$0xff]  ;;  %v2562_v13 = vld [vmem:[#allocation4 + $0x18] sm:$0xff]  ;;  %v2329_v46 = vmov 0  }
  0x37   :  { %v474_v11 = vsub.s32 6, %v2551_v9  ;;  %v2566_v17 = vld [vmem:[#allocation4 + $0x10] sm:$0xff]  ;;  %v562_v18 = vld [vmem:[#allocation7 + $0x8] sm:$0xff]  ;;  %v417_v45 = vsub.s32 5, %v2551_v9  ;;  %2207 = vset.pattern.permute.xlu1 %v2329_v46  ;;  %2206 = vset.pattern.permute.xlu0 %v2329_v46  ;;  %v644_v48 = vld [vmem:[%s3924_s3 + $0x18] sm:$0xff] }
  0x38   :  { %461 = vrot.lane.b32.xlu1 %v2416_v2, %s2322_s28  ;;  %453 = vrot.lane.b32.xlu0 %v2421_v3, %s2322_s28  ;;  %vm463_vm1 = vcmp.lt.s32.totalorder %v2557_v10, 112  ;;  %v643_v47 = vld [vmem:[%s3924_s3 + $0x10] sm:$0xff]  ;;  %vm406_vm2 = vcmp.lt.s32.totalorder %v2557_v10, 113  ;;  %vm349_vm3 = vcmp.lt.s32.totalorder %v2557_v10, 127  ;;  %vm284_vm4 = vcmp.lt.s32.totalorder %v2557_v10, 1 }
  0x39   :  { %v2574_v19 = vrot.slane %v2560_v12, %v474_v11  ;;  %v2577_v20 = vrot.slane %v2562_v13, %v474_v11  ;;  %v2580_v21 = vrot.slane %v2564_v14, %v474_v11  ;;  %v2583_v22 = vrot.slane %v2566_v17, %v474_v11  ;;  %2169 = vmatprep.mubr.msk.f32.mxu0 %vm665_vm0, %v562_v18 }
  0x3a   :  { %2173 = vmatprep.mubr.msk.f32.mxu1 %vm665_vm0, %v562_v18  ;;  %v2628_v51 = vrot.slane %v2560_v12, %v417_v45  ;;  %v2631_v52 = vrot.slane %v2562_v13, %v417_v45  ;;  %v2634_v53 = vrot.slane %v2566_v17, %v417_v45  ;;  %v2637_v54 = vrot.slane %v2564_v14, %v417_v45 }
  0x3b   :  { %vm227_vm5 = vcmp.lt.s32.totalorder %v2557_v10, 15  ;;  %vm170_vm6 = vcmp.lt.s32.totalorder %v2557_v10, 16  ;;  %vm113_vm7 = vcmp.lt.s32.totalorder %v2557_v10, 17  ;;  %vm520_vm8 = vcmp.lt.s32.totalorder %v2557_v10, 111 }
  0x3c   :  { %451 = vrot.lane.b32.xlu1 %v2430_v4, %s2322_s28  ;;  %447 = vrot.lane.b32.xlu0 %v2435_v5, %s2322_s28 }
  0x40   :  { %459 = vrot.lane.b32.xlu1 %v2444_v6, %s2322_s28  ;;  %455 = vrot.lane.b32.xlu0 %v2449_v7, %s2322_s28 }
  0x44   :  { %396 = vrot.lane.b32.xlu1 %v2421_v3, %s2323_s19  ;;  %392 = vrot.lane.b32.xlu0 %v2407_v1, %s2323_s19 }
  0x48   :  { %404 = vrot.lane.b32.xlu1 %v2416_v2, %s2323_s19  ;;  %400 = vrot.lane.b32.xlu0 %v2402_v0, %s2323_s19 }
  0x4c   :  { %394 = vrot.lane.b32.xlu1 %v2430_v4, %s2323_s19  ;;  %390 = vrot.lane.b32.xlu0 %v2435_v5, %s2323_s19 }
  0x50   :  { %402 = vrot.lane.b32.xlu1 %v2444_v6, %s2323_s19  ;;  %398 = vrot.lane.b32.xlu0 %v2449_v7, %s2323_s19 }
  0x54   :  { %339 = vrot.lane.b32.xlu1 %v2421_v3, %s2324_s1  ;;  %335 = vrot.lane.b32.xlu0 %v2407_v1, %s2324_s1 }
  0x58   :  { %347 = vrot.lane.b32.xlu1 %v2416_v2, %s2324_s1  ;;  %343 = vrot.lane.b32.xlu0 %v2402_v0, %s2324_s1 }
  0x5c   :  { %337 = vrot.lane.b32.xlu1 %v2430_v4, %s2324_s1  ;;  %333 = vrot.lane.b32.xlu0 %v2435_v5, %s2324_s1 }
  0x60   :  { %345 = vrot.lane.b32.xlu1 %v2444_v6, %s2324_s1  ;;  %341 = vrot.lane.b32.xlu0 %v2449_v7, %s2324_s1 }
  0x64   :  { %274 = vrot.lane.b32.xlu1 %v2421_v3, %s2325_s2  ;;  %270 = vrot.lane.b32.xlu0 %v2407_v1, %s2325_s2 }
  0x68   :  { %282 = vrot.lane.b32.xlu1 %v2416_v2, %s2325_s2  ;;  %278 = vrot.lane.b32.xlu0 %v2402_v0, %s2325_s2 }
  0x6c   :  { %272 = vrot.lane.b32.xlu1 %v2430_v4, %s2325_s2  ;;  %268 = vrot.lane.b32.xlu0 %v2435_v5, %s2325_s2 }
  0x70   :  { %280 = vrot.lane.b32.xlu1 %v2444_v6, %s2325_s2  ;;  %276 = vrot.lane.b32.xlu0 %v2449_v7, %s2325_s2 }
  0x74   :  { %217 = vrot.lane.b32.xlu1 %v2421_v3, %s2326_s20  ;;  %213 = vrot.lane.b32.xlu0 %v2407_v1, %s2326_s20 }
  0x78   :  { %225 = vrot.lane.b32.xlu1 %v2416_v2, %s2326_s20  ;;  %221 = vrot.lane.b32.xlu0 %v2402_v0, %s2326_s20 }
  0x7c   :  { %215 = vrot.lane.b32.xlu1 %v2430_v4, %s2326_s20  ;;  %211 = vrot.lane.b32.xlu0 %v2435_v5, %s2326_s20 }
  0x80   :  { %223 = vrot.lane.b32.xlu1 %v2444_v6, %s2326_s20  ;;  %219 = vrot.lane.b32.xlu0 %v2449_v7, %s2326_s20 }
  0x84   :  { %160 = vrot.lane.b32.xlu1 %v2421_v3, %s2318_s9  ;;  %156 = vrot.lane.b32.xlu0 %v2407_v1, %s2318_s9 }
  0x88   :  { %168 = vrot.lane.b32.xlu1 %v2416_v2, %s2318_s9  ;;  %164 = vrot.lane.b32.xlu0 %v2402_v0, %s2318_s9 }
  0x8c   :  { %158 = vrot.lane.b32.xlu1 %v2430_v4, %s2318_s9  ;;  %154 = vrot.lane.b32.xlu0 %v2435_v5, %s2318_s9 }
  0x90   :  { %166 = vrot.lane.b32.xlu1 %v2444_v6, %s2318_s9  ;;  %162 = vrot.lane.b32.xlu0 %v2449_v7, %s2318_s9 }
  0x94   :  { %101 = vrot.lane.b32.xlu1 %v2421_v3, %s2327_s21  ;;  %97 = vrot.lane.b32.xlu0 %v2407_v1, %s2327_s21 }
  0x98   :  { %109 = vrot.lane.b32.xlu1 %v2416_v2, %s2327_s21  ;;  %105 = vrot.lane.b32.xlu0 %v2402_v0, %s2327_s21 }
  0x9c   :  { %99 = vrot.lane.b32.xlu1 %v2430_v4, %s2327_s21  ;;  %95 = vrot.lane.b32.xlu0 %v2435_v5, %s2327_s21 }
  0xa0   :  { %107 = vrot.lane.b32.xlu1 %v2444_v6, %s2327_s21  ;;  %103 = vrot.lane.b32.xlu0 %v2449_v7, %s2327_s21 }
  0xa4   :  { %510 = vrot.lane.b32.xlu1 %v2421_v3, %s2328_s22  ;;  %506 = vrot.lane.b32.xlu0 %v2407_v1, %s2328_s22 }
  0xa6   :  { %v458_v15 = vpop.permute.xlu1 %457  ;;  %v450_v16 = vpop.permute.xlu0 %449 }
  0xa8   :  { %518 = vrot.lane.b32.xlu1 %v2416_v2, %s2328_s22  ;;  %514 = vrot.lane.b32.xlu0 %v2402_v0, %s2328_s22 }
  0xaa   :  { %v462_v23 = vpop.permute.xlu1 %461  ;;  %v454_v24 = vpop.permute.xlu0 %453 }
  0xab   :  { %v467_v25 = vsel %vm463_vm1, %v454_v24, %v458_v15  ;;  %v471_v26 = vsel %vm463_vm1, %v462_v23, %v450_v16  ;;  %v469_v27 = vsel %vm463_vm1, %v450_v16, %v454_v24  ;;  %v465_v28 = vsel %vm463_vm1, %v458_v15, %v462_v23 }
  0xac   :  { %508 = vrot.lane.b32.xlu1 %v2430_v4, %s2328_s22  ;;  %504 = vrot.lane.b32.xlu0 %v2435_v5, %s2328_s22  ;;  %v493_v29 = vmul.f32 %v2574_v19, %v467_v25  ;;  %v495_v30 = vmul.f32 %v2577_v20, %v471_v26  ;;  %v492_v31 = vmul.f32 %v2580_v21, %v469_v27 }
  0xad   :  { %v494_v32 = vmul.f32 %v2583_v22, %v465_v28 }
  0xae   :  { %v452_v33 = vpop.permute.xlu1 %451  ;;  %v448_v34 = vpop.permute.xlu0 %447  ;;  %678 = vmatprep.subr.mxu0 %v493_v29  ;;  %767 = vmatprep.subr.mxu1 %v495_v30 }
  0xaf   :  { %679 = vmatpush1.msra.mxu0 %v492_v31  ;;  %768 = vmatpush1.msra.mxu1 %v494_v32  ;;  %v468_v35 = vsel %vm463_vm1, %v448_v34, %v452_v33  ;;  %v360_v31 = vsub.s32 4, %v2551_v9 }
  0xb0   :  { %516 = vrot.lane.b32.xlu1 %v2444_v6, %s2328_s22  ;;  %512 = vrot.lane.b32.xlu0 %v2449_v7, %s2328_s22  ;;  %v488_v44 = vmul.f32 %v2580_v21, %v468_v35 }
  0xb1   :  { %v2669_v35 = vrot.slane %v2562_v13, %v360_v31 }
  0xb2   :  { %v460_v36 = vpop.permute.xlu1 %459  ;;  %v456_v37 = vpop.permute.xlu0 %455 }
  0xb3   :  { %v470_v38 = vsel %vm463_vm1, %v460_v36, %v448_v34  ;;  %v464_v39 = vsel %vm463_vm1, %v456_v37, %v460_v36  ;;  %v466_v40 = vsel %vm463_vm1, %v452_v33, %v456_v37  ;;  %v2666_v34 = vrot.slane %v2560_v12, %v360_v31 }
  0xb4   :  { %v489_v41 = vmul.f32 %v2574_v19, %v466_v40  ;;  %v491_v42 = vmul.f32 %v2577_v20, %v470_v38  ;;  %v490_v43 = vmul.f32 %v2583_v22, %v464_v39  ;;  %657 = vperm.xlu1 %2207, %v643_v47   ;;  %662 = vperm.xlu0 %2206, %v644_v48  }
  0xb5   :  { %v2672_v36 = vrot.slane %v2566_v17, %v360_v31  ;;  %v2675_v37 = vrot.slane %v2564_v14, %v360_v31 }
  0xb6   :  { %v397_v49 = vpop.permute.xlu1 %396  ;;  %v393_v50 = vpop.permute.xlu0 %392  ;;  %680 = vmatprep.subr.mxu0 %v489_v41  ;;  %769 = vmatprep.subr.mxu1 %v491_v42 }
  0xb7   :  { %681 = vmatpush1.msra.mxu0 %v488_v44  ;;  %770 = vmatpush1.msra.mxu1 %v490_v43  ;;  %v412_v55 = vsel %vm406_vm2, %v393_v50, %v397_v49 }
  0xb8   :  { %v435_v8 = vmul.f32 %v2637_v54, %v412_v55 }
  0xba   :  { %v405_v56 = vpop.permute.xlu1 %404  ;;  %v401_v57 = vpop.permute.xlu0 %400 }
  0xbb   :  { %v414_v58 = vsel %vm406_vm2, %v405_v56, %v393_v50  ;;  %v408_v59 = vsel %vm406_vm2, %v401_v57, %v405_v56  ;;  %v410_v60 = vsel %vm406_vm2, %v397_v49, %v401_v57  ;;  %v295_v57 = vsub.s32 3, %v2551_v9 }
  0xbc   :  { %v436_v61 = vmul.f32 %v2628_v51, %v410_v60  ;;  %v438_v62 = vmul.f32 %v2631_v52, %v414_v58  ;;  %v437_v63 = vmul.f32 %v2634_v53, %v408_v59 }
  0xbe   :  { %v395_v11 = vpop.permute.xlu1 %394  ;;  %v391_v15 = vpop.permute.xlu0 %390  ;;  %682 = vmatprep.subr.mxu0 %v436_v61  ;;  %771 = vmatprep.subr.mxu1 %v438_v62 }
  0xbf   :  { %683 = vmatpush1.msra.mxu0 %v435_v8  ;;  %772 = vmatpush1.msra.mxu1 %v437_v63  ;;  %v411_v16 = vsel %vm406_vm2, %v391_v15, %v395_v11 }
  0xc0   :  { %v431_v30 = vmul.f32 %v2637_v54, %v411_v16  ;;  %v2704_v16 = vrot.slane %v2560_v12, %v295_v57 }
  0xc2   :  { %v403_v18 = vpop.permute.xlu1 %402  ;;  %v399_v23 = vpop.permute.xlu0 %398 }
  0xc3   :  { %v413_v24 = vsel %vm406_vm2, %v403_v18, %v391_v15  ;;  %v407_v25 = vsel %vm406_vm2, %v399_v23, %v403_v18  ;;  %v409_v26 = vsel %vm406_vm2, %v395_v11, %v399_v23  ;;  %v2711_v23 = vrot.slane %v2564_v14, %v295_v57 }
  0xc4   :  { %v432_v27 = vmul.f32 %v2628_v51, %v409_v26  ;;  %v434_v28 = vmul.f32 %v2631_v52, %v413_v24  ;;  %v433_v29 = vmul.f32 %v2634_v53, %v407_v25  ;;  %v2714_v24 = vrot.slane %v2562_v13, %v295_v57 }
  0xc5   :  { %v2717_v25 = vrot.slane %v2566_v17, %v295_v57 }
  0xc6   :  { %v340_v32 = vpop.permute.xlu1 %339  ;;  %v336_v33 = vpop.permute.xlu0 %335  ;;  %684 = vmatprep.subr.mxu0 %v432_v27  ;;  %773 = vmatprep.subr.mxu1 %v434_v28 }
  0xc7   :  { %685 = vmatpush1.msra.mxu0 %v431_v30  ;;  %774 = vmatpush1.msra.mxu1 %v433_v29  ;;  %v355_v38 = vsel %vm349_vm3, %v336_v33, %v340_v32 }
  0xc8   :  { %v378_v47 = vmul.f32 %v2675_v37, %v355_v38 }
  0xca   :  { %v348_v39 = vpop.permute.xlu1 %347  ;;  %v344_v40 = vpop.permute.xlu0 %343 }
  0xcb   :  { %v357_v41 = vsel %vm349_vm3, %v348_v39, %v336_v33  ;;  %v351_v42 = vsel %vm349_vm3, %v344_v40, %v348_v39  ;;  %v353_v43 = vsel %vm349_vm3, %v340_v32, %v344_v40 }
  0xcc   :  { %v379_v44 = vmul.f32 %v2666_v34, %v353_v43  ;;  %v381_v45 = vmul.f32 %v2669_v35, %v357_v41  ;;  %v380_v46 = vmul.f32 %v2672_v36, %v351_v42 }
  0xce   :  { %v338_v48 = vpop.permute.xlu1 %337  ;;  %v334_v49 = vpop.permute.xlu0 %333  ;;  %686 = vmatprep.subr.mxu0 %v379_v44  ;;  %775 = vmatprep.subr.mxu1 %v381_v45 }
  0xcf   :  { %687 = vmatpush1.msra.mxu0 %v378_v47  ;;  %776 = vmatpush1.msra.mxu1 %v380_v46  ;;  %v354_v50 = vsel %vm349_vm3, %v334_v49, %v338_v48 }
  0xd0   :  { %v374_v8 = vmul.f32 %v2675_v37, %v354_v50 }
  0xd2   :  { %v346_v55 = vpop.permute.xlu1 %345  ;;  %v342_v56 = vpop.permute.xlu0 %341 }
  0xd3   :  { %v356_v58 = vsel %vm349_vm3, %v346_v55, %v334_v49  ;;  %v350_v59 = vsel %vm349_vm3, %v342_v56, %v346_v55  ;;  %v352_v60 = vsel %vm349_vm3, %v338_v48, %v342_v56 }
  0xd4   :  { %v375_v61 = vmul.f32 %v2666_v34, %v352_v60  ;;  %v377_v62 = vmul.f32 %v2669_v35, %v356_v58  ;;  %v376_v63 = vmul.f32 %v2672_v36, %v350_v59 }
  0xd6   :  { %v275_v11 = vpop.permute.xlu1 %274  ;;  %v271_v15 = vpop.permute.xlu0 %270  ;;  %688 = vmatprep.subr.mxu0 %v375_v61  ;;  %777 = vmatprep.subr.mxu1 %v377_v62 }
  0xd7   :  { %v290_v18 = vsel %vm284_vm4, %v271_v15, %v275_v11  ;;  %689 = vmatpush1.msra.mxu0 %v374_v8  ;;  %778 = vmatpush1.msra.mxu1 %v376_v63 }
  0xd8   :  { %690 = vmatprep.subr.mxu0 %v2421_v3  ;;  %779 = vmatprep.subr.mxu1 %v2416_v2  ;;  %v314_v3 = vmul.f32 %v2704_v16, %v290_v18 }
  0xd9   :  { %691 = vmatpush1.msra.mxu0 %v2407_v1  ;;  %780 = vmatpush1.msra.mxu1 %v2402_v0 }
  0xda   :  { %v283_v26 = vpop.permute.xlu1 %282  ;;  %v279_v27 = vpop.permute.xlu0 %278  ;;  %692 = vmatprep.subr.mxu0 %v2430_v4  ;;  %781 = vmatprep.subr.mxu1 %v2444_v6 }
  0xdb   :  { %v292_v2 = vsel %vm284_vm4, %v283_v26, %v271_v15  ;;  %v286_v28 = vsel %vm284_vm4, %v279_v27, %v283_v26  ;;  %v288_v29 = vsel %vm284_vm4, %v275_v11, %v279_v27  ;;  %693 = vmatpush1.msra.mxu0 %v2435_v5  ;;  %782 = vmatpush1.msra.mxu1 %v2449_v7  ;;  %v238_v5 = vsub.s32 2, %v2551_v9 }
  0xdc   :  { %694 = vmatprep.subr.mxu0 %v314_v3  ;;  %v313_v0 = vmul.f32 %v2711_v23, %v292_v2  ;;  %v316_v1 = vmul.f32 %v2714_v24, %v286_v28  ;;  %v315_v4 = vmul.f32 %v2717_v25, %v288_v29  ;;  %v181_v26 = vsub.s32 1, %v2551_v9 }
  0xdd   :  { %v2750_v44 = vrot.slane %v2560_v12, %v238_v5  ;;  %v2756_v49 = vrot.slane %v2564_v14, %v238_v5  ;;  %v2759_v50 = vrot.slane %v2562_v13, %v238_v5  ;;  %v2762_v55 = vrot.slane %v2566_v17, %v238_v5 }
  0xde   :  { %v273_v6 = vpop.permute.xlu1 %272  ;;  %v269_v30 = vpop.permute.xlu0 %268  ;;  %695 = vmatpush1.msra.mxu0 %v313_v0  ;;  %783 = vmatprep.subr.mxu1 %v316_v1 }
  0xdf   :  { %v289_v31 = vsel %vm284_vm4, %v269_v30, %v273_v6  ;;  %784 = vmatpush1.msra.mxu1 %v315_v4  ;;  %3986 = vst [vmem:[#allocation17_spill] sm:$0xff] %v2762_v55 }
  0xe0   :  { %v310_v32 = vmul.f32 %v2704_v16, %v289_v31 }
  0xe2   :  { %v281_v7 = vpop.permute.xlu1 %280  ;;  %v277_v33 = vpop.permute.xlu0 %276  ;;  %696 = vmatprep.subr.mxu0 %v310_v32 }
  0xe3   :  { %v291_v38 = vsel %vm284_vm4, %v281_v7, %v269_v30  ;;  %v285_v39 = vsel %vm284_vm4, %v277_v33, %v281_v7  ;;  %v287_v40 = vsel %vm284_vm4, %v273_v6, %v277_v33  ;;  %v2788_v6 = vrot.slane %v2560_v12, %v181_v26 }
  0xe4   :  { %v309_v41 = vmul.f32 %v2711_v23, %v291_v38  ;;  %v312_v42 = vmul.f32 %v2714_v24, %v285_v39  ;;  %v311_v43 = vmul.f32 %v2717_v25, %v287_v40  ;;  %v2794_v7 = vrot.slane %v2564_v14, %v181_v26 }
  0xe5   :  { %3987 = vst [vmem:[#allocation18_spill] sm:$0xff] %v2788_v6  ;;  %v2797_v33 = vrot.slane %v2562_v13, %v181_v26  ;;  %v2800_v38 = vrot.slane %v2566_v17, %v181_v26 }
  0xe6   :  { %v218_v45 = vpop.permute.xlu1 %217  ;;  %v214_v46 = vpop.permute.xlu0 %213  ;;  %697 = vmatpush1.msra.mxu0 %v309_v41  ;;  %785 = vmatprep.subr.mxu1 %v312_v42  ;;  %3988 = vst [vmem:[#allocation19_spill] sm:$0xff] %v2794_v7 }
  0xe7   :  { %v233_v47 = vsel %vm227_vm5, %v214_v46, %v218_v45  ;;  %786 = vmatpush1.msra.mxu1 %v311_v43  ;;  %3989 = vst [vmem:[#allocation20_spill] sm:$0xff] %v2797_v33  ;;  %3990 = vst [vmem:[#allocation21_spill] sm:$0xff] %v2800_v38 }
  0xe8   :  { %v257_v48 = vmul.f32 %v2750_v44, %v233_v47 }
  0xea   :  { %v226_v56 = vpop.permute.xlu1 %225  ;;  %v222_v57 = vpop.permute.xlu0 %221  ;;  %698 = vmatprep.subr.mxu0 %v257_v48 }
  0xeb   :  { %v235_v58 = vsel %vm227_vm5, %v226_v56, %v214_v46  ;;  %v229_v59 = vsel %vm227_vm5, %v222_v57, %v226_v56  ;;  %v231_v60 = vsel %vm227_vm5, %v218_v45, %v222_v57 }
  0xec   :  { %v256_v61 = vmul.f32 %v2756_v49, %v235_v58  ;;  %v259_v62 = vmul.f32 %v2759_v50, %v229_v59  ;;  %v258_v63 = vmul.f32 %v2762_v55, %v231_v60  ;;  %v124_v59 = vsub.s32 0, %v2551_v9 }
  0xee   :  { %v216_v8 = vpop.permute.xlu1 %215  ;;  %v212_v11 = vpop.permute.xlu0 %211  ;;  %699 = vmatpush1.msra.mxu0 %v256_v61  ;;  %787 = vmatprep.subr.mxu1 %v259_v62  ;;  %v2826_v26 = vrot.slane %v2560_v12, %v124_v59 }
  0xef   :  { %v232_v15 = vsel %vm227_vm5, %v212_v11, %v216_v8  ;;  %788 = vmatpush1.msra.mxu1 %v258_v63 }
  0xf0   :  { %v253_v18 = vmul.f32 %v2750_v44, %v232_v15  ;;  %3991 = vst [vmem:[#allocation22_spill] sm:$0xff] %v2826_v26 }
  0xf2   :  { %v224_v27 = vpop.permute.xlu1 %223  ;;  %v220_v3 = vpop.permute.xlu0 %219  ;;  %700 = vmatprep.subr.mxu0 %v253_v18 }
  0xf3   :  { %v234_v2 = vsel %vm227_vm5, %v224_v27, %v212_v11  ;;  %v228_v28 = vsel %vm227_vm5, %v220_v3, %v224_v27  ;;  %v230_v29 = vsel %vm227_vm5, %v216_v8, %v220_v3 }
  0xf4   :  { %v252_v0 = vmul.f32 %v2756_v49, %v234_v2  ;;  %v255_v1 = vmul.f32 %v2759_v50, %v228_v28  ;;  %v254_v4 = vmul.f32 %v2762_v55, %v230_v29  ;;  %v2832_v29 = vrot.slane %v2564_v14, %v124_v59 }
  0xf6   :  { %v161_v30 = vpop.permute.xlu1 %160  ;;  %v157_v31 = vpop.permute.xlu0 %156  ;;  %701 = vmatpush1.msra.mxu0 %v252_v0  ;;  %789 = vmatprep.subr.mxu1 %v255_v1  ;;  %3992 = vst [vmem:[#allocation23_spill] sm:$0xff] %v2832_v29  ;;  %v2835_v0 = vrot.slane %v2562_v13, %v124_v59  ;;  %v2838_v1 = vrot.slane %v2566_v17, %v124_v59 }
  0xf7   :  { %v176_v32 = vsel %vm170_vm6, %v157_v31, %v161_v30  ;;  %790 = vmatpush1.msra.mxu1 %v254_v4 }
  0xf8   :  { %v200_v5 = vmul.f32 %v2788_v6, %v176_v32  ;;  %3993 = vst [vmem:[#allocation24_spill] sm:$0xff] %v2835_v0  ;;  %3994 = vst [vmem:[#allocation25_spill] sm:$0xff] %v2838_v1 }
  0xfa   :  { %v169_v39 = vpop.permute.xlu1 %168  ;;  %v165_v40 = vpop.permute.xlu0 %164  ;;  %702 = vmatprep.subr.mxu0 %v200_v5 }
  0xfb   :  { %v178_v41 = vsel %vm170_vm6, %v169_v39, %v157_v31  ;;  %v172_v42 = vsel %vm170_vm6, %v165_v40, %v169_v39  ;;  %v174_v43 = vsel %vm170_vm6, %v161_v30, %v165_v40 }
  0xfc   :  { %v199_v45 = vmul.f32 %v2794_v7, %v178_v41  ;;  %v202_v46 = vmul.f32 %v2797_v33, %v172_v42  ;;  %v201_v47 = vmul.f32 %v2800_v38, %v174_v43 }
  0xfe   :  { %v159_v48 = vpop.permute.xlu1 %158  ;;  %v155_v56 = vpop.permute.xlu0 %154  ;;  %703 = vmatpush1.msra.mxu0 %v199_v45  ;;  %791 = vmatprep.subr.mxu1 %v202_v46 }
  0xff   :  { %v175_v57 = vsel %vm170_vm6, %v155_v56, %v159_v48  ;;  %792 = vmatpush1.msra.mxu1 %v201_v47 }
 0x100   :  { %v196_v58 = vmul.f32 %v2788_v6, %v175_v57 }
 0x102   :  { %v167_v60 = vpop.permute.xlu1 %166  ;;  %v163_v61 = vpop.permute.xlu0 %162  ;;  %704 = vmatprep.subr.mxu0 %v196_v58 }
 0x103   :  { %v177_v62 = vsel %vm170_vm6, %v167_v60, %v155_v56  ;;  %v171_v63 = vsel %vm170_vm6, %v163_v61, %v167_v60  ;;  %v173_v8 = vsel %vm170_vm6, %v159_v48, %v163_v61 }
 0x104   :  { %v195_v11 = vmul.f32 %v2794_v7, %v177_v62  ;;  %v198_v15 = vmul.f32 %v2797_v33, %v171_v63  ;;  %v197_v18 = vmul.f32 %v2800_v38, %v173_v8  ;;  %v531_v62 = vsub.s32 7, %v2551_v9 }
 0x106   :  { %v102_v27 = vpop.permute.xlu1 %101  ;;  %v98_v3 = vpop.permute.xlu0 %97  ;;  %705 = vmatpush1.msra.mxu0 %v195_v11  ;;  %793 = vmatprep.subr.mxu1 %v198_v15  ;;  %v2864_v11 = vrot.slane %v2560_v12, %v531_v62  ;;  %v2867_v15 = vrot.slane %v2562_v13, %v531_v62 }
 0x107   :  { %v119_v2 = vsel %vm113_vm7, %v98_v3, %v102_v27  ;;  %794 = vmatpush1.msra.mxu1 %v197_v18  ;;  %v2870_v18 = vrot.slane %v2566_v17, %v531_v62 }
 0x108   :  { %v143_v28 = vmul.f32 %v2826_v26, %v119_v2  ;;  %3995 = vst [vmem:[#allocation26_spill] sm:$0xff] %v2864_v11  ;;  %3996 = vst [vmem:[#allocation27_spill] sm:$0xff] %v2867_v15 }
 0x109   :  { %3997 = vst [vmem:[#allocation28_spill] sm:$0xff] %v2870_v18 }
 0x10a   :  { %v110_v4 = vpop.permute.xlu1 %109  ;;  %v106_v30 = vpop.permute.xlu0 %105  ;;  %706 = vmatprep.subr.mxu0 %v143_v28 }
 0x10b   :  { %v121_v31 = vsel %vm113_vm7, %v110_v4, %v98_v3  ;;  %v115_v32 = vsel %vm113_vm7, %v106_v30, %v110_v4  ;;  %v117_v5 = vsel %vm113_vm7, %v102_v27, %v106_v30  ;;  %v2873_v27 = vrot.slane %v2564_v14, %v531_v62  ;;  %v567_v62 = vld [vmem:[#allocation7 + $0x30] sm:$0xff] }
 0x10c   :  { %v142_v39 = vmul.f32 %v2832_v29, %v121_v31  ;;  %v145_v40 = vmul.f32 %v2835_v0, %v115_v32  ;;  %v144_v41 = vmul.f32 %v2838_v1, %v117_v5 }
 0x10d   :  { %3998 = vst [vmem:[#allocation29_spill] sm:$0xff] %v2873_v27 }
 0x10e   :  { %v100_v42 = vpop.permute.xlu1 %99  ;;  %v96_v43 = vpop.permute.xlu0 %95  ;;  %707 = vmatpush1.msra.mxu0 %v142_v39  ;;  %795 = vmatprep.subr.mxu1 %v145_v40 }
 0x10f   :  { %v118_v45 = vsel %vm113_vm7, %v96_v43, %v100_v42  ;;  %796 = vmatpush1.msra.mxu1 %v144_v41 }
 0x110   :  { %v139_v46 = vmul.f32 %v2826_v26, %v118_v45 }
 0x112   :  { %v108_v47 = vpop.permute.xlu1 %107  ;;  %v104_v48 = vpop.permute.xlu0 %103  ;;  %708 = vmatprep.subr.mxu0 %v139_v46 }
 0x113   :  { %v120_v56 = vsel %vm113_vm7, %v108_v47, %v96_v43  ;;  %v114_v57 = vsel %vm113_vm7, %v104_v48, %v108_v47  ;;  %v116_v58 = vsel %vm113_vm7, %v100_v42, %v104_v48 }
 0x114   :  { %v138_v59 = vmul.f32 %v2832_v29, %v120_v56  ;;  %v141_v60 = vmul.f32 %v2835_v0, %v114_v57  ;;  %v140_v61 = vmul.f32 %v2838_v1, %v116_v58  ;;  %v561_v56 = vld [vmem:[#allocation7] sm:$0xff]  ;;  %v564_v57 = vld [vmem:[#allocation7 + $0x18] sm:$0xff]  ;;  %v563_v58 = vld [vmem:[#allocation7 + $0x10] sm:$0xff] }
 0x116   :  { %v511_v63 = vpop.permute.xlu1 %510  ;;  %v507_v8 = vpop.permute.xlu0 %506  ;;  %709 = vmatpush1.msra.mxu0 %v138_v59  ;;  %797 = vmatprep.subr.mxu1 %v141_v60  ;;  %v566_v59 = vld [vmem:[#allocation7 + $0x28] sm:$0xff]  ;;  %v565_v60 = vld [vmem:[#allocation7 + $0x20] sm:$0xff] }
 0x117   :  { %798 = vmatpush1.msra.mxu1 %v140_v61  ;;  %v526_v9 = vsel %vm520_vm8, %v507_v8, %v511_v63  ;;  %v568_v61 = vld [vmem:[#allocation7 + $0x38] sm:$0xff] }
 0x118   :  { %v549_v30 = vmul.f32 %v2873_v27, %v526_v9 }
 0x11a   :  { %v519_v3 = vpop.permute.xlu1 %518  ;;  %v515_v2 = vpop.permute.xlu0 %514 }
 0x11b   :  { %v528_v28 = vsel %vm520_vm8, %v519_v3, %v507_v8  ;;  %v522_v12 = vsel %vm520_vm8, %v515_v2, %v519_v3  ;;  %v524_v13 = vsel %vm520_vm8, %v511_v63, %v515_v2 }
 0x11c   :  { %v550_v17 = vmul.f32 %v2864_v11, %v524_v13  ;;  %v552_v4 = vmul.f32 %v2867_v15, %v528_v28  ;;  %v551_v14 = vmul.f32 %v2870_v18, %v522_v12 }
 0x11e   :  { %v509_v31 = vpop.permute.xlu1 %508  ;;  %v505_v32 = vpop.permute.xlu0 %504  ;;  %738 = vmatprep.subr.mxu0 %v550_v17  ;;  %827 = vmatprep.subr.mxu1 %v552_v4 }
 0x11f   :  { %739 = vmatpush2.msra.mxu0 %v549_v30  ;;  %828 = vmatpush2.msra.mxu1 %v551_v14  ;;  %v525_v5 = vsel %vm520_vm8, %v505_v32, %v509_v31 }
 0x120   :  { %v545_v48 = vmul.f32 %v2873_v27, %v525_v5 }
 0x122   :  { %v517_v39 = vpop.permute.xlu1 %516  ;;  %v513_v40 = vpop.permute.xlu0 %512 }
 0x123   :  { %v527_v41 = vsel %vm520_vm8, %v517_v39, %v505_v32  ;;  %v521_v42 = vsel %vm520_vm8, %v513_v40, %v517_v39  ;;  %v523_v43 = vsel %vm520_vm8, %v509_v31, %v513_v40 }
 0x124   :  { %v546_v45 = vmul.f32 %v2864_v11, %v523_v43  ;;  %v548_v46 = vmul.f32 %v2867_v15, %v527_v41  ;;  %v547_v47 = vmul.f32 %v2870_v18, %v521_v42 }
 0x126   :  { %740 = vmatprep.subr.mxu0 %v546_v45  ;;  %829 = vmatprep.subr.mxu1 %v548_v46 }
 0x127   :  { %741 = vmatpush2.msra.mxu0 %v545_v48  ;;  %830 = vmatpush2.msra.mxu1 %v547_v47 }
 0x128   :  { %743 = vmatmul.mubr.f32.vlgmr.msra.gmra.mxu0 %v561_v56  ;;  %832 = vmatmul.mubr.f32.vlgmr.msra.gmra.mxu1 %v561_v56 }
 0x129   :  { %2170 = vmatprep.mubr.msk.f32.mxu0 %vm665_vm0, %v564_v57  ;;  %2174 = vmatprep.mubr.msk.f32.mxu1 %vm665_vm0, %v564_v57 }
 0x12c   :  { %749 = vmatmul.mubr.f32.gmra.mxu0 %v563_v58  ;;  %838 = vmatmul.mubr.f32.gmra.mxu1 %v563_v58 }
 0x12d   :  { %2171 = vmatprep.mubr.msk.f32.mxu0 %vm665_vm0, %v566_v59  ;;  %2175 = vmatprep.mubr.msk.f32.mxu1 %vm665_vm0, %v566_v59 }
 0x12f   :  { %v658_v12 = vpop.permute.xlu1 %657  ;;  %v663_v58 = vpop.permute.xlu0 %662 }
 0x130   :  { %755 = vmatmul.mubr.f32.gmra.mxu0 %v565_v60  ;;  %844 = vmatmul.mubr.f32.gmra.mxu1 %v565_v60 }
 0x131   :  { %2172 = vmatprep.mubr.msk.f32.mxu0 %vm665_vm0, %v568_v61  ;;  %2176 = vmatprep.mubr.msk.f32.mxu1 %vm665_vm0, %v568_v61 }
 0x134   :  { %761 = vmatmul.mubr.f32.gmra.mxu0 %v567_v62  ;;  %850 = vmatmul.mubr.f32.gmra.mxu1 %v567_v62 }
 0x1e8   :  { %v2905_v63 = vpop.f32.mrf.mxu0  ;;  %v2907_v8 = vpop.f32.mrf.mxu1 }
 0x1e9   :  { %3999 = vst [vmem:[#allocation30_spill] sm:$0xff] %v2905_v63  ;;  %4000 = vst [vmem:[#allocation31_spill] sm:$0xff] %v2907_v8 }
 0x1ea   :  { %v2909_v9 = vpop.f32.mrf.mxu0  ;;  %v2911_v3 = vpop.f32.mrf.mxu1 }
 0x1eb   :  { %4001 = vst [vmem:[#allocation32_spill] sm:$0xff] %v2909_v9  ;;  %4002 = vst [vmem:[#allocation33_spill] sm:$0xff] %v2911_v3 }
 0x1ec   :  { %v2913_v2 = vpop.f32.mrf.mxu0  ;;  %v2915_v28 = vpop.f32.mrf.mxu1 }
 0x1ed   :  { %4003 = vst [vmem:[#allocation34_spill] sm:$0xff] %v2913_v2  ;;  %4004 = vst [vmem:[#allocation35_spill] sm:$0xff] %v2915_v28 }
 0x1ee   :  { %v2917_v13 = vpop.f32.mrf.mxu0  ;;  %v2919_v17 = vpop.f32.mrf.mxu1 }
 0x1ef   :  { %4005 = vst [vmem:[#allocation36_spill] sm:$0xff] %v2917_v13  ;;  %4006 = vst [vmem:[#allocation37_spill] sm:$0xff] %v2919_v17 }
 0x1f0   :  { %v756_v4 = vpop.f32.mrf.mxu0  ;;  %v845_v14 = vpop.f32.mrf.mxu1 }
 0x1f1   :  { %v757_v30 = vadd.f32 %v756_v4, %v658_v12  ;;  %v846_v31 = vadd.f32 %v845_v14, %v658_v12 }
 0x1f2   :  { %v758_v32 = vpop.f32.mrf.mxu0  ;;  %v847_v5 = vpop.f32.mrf.mxu1 }
 0x1f3   :  { %vm872_vm9 = vcmp.ge.f32.partialorder %v757_v30, 0.0  ;;  %v880_v39 = vmul.f32 0.1, %v757_v30  ;;  %v759_v40 = vadd.f32 %v758_v32, %v658_v12  ;;  %v848_v41 = vadd.f32 %v847_v5, %v658_v12 }
 0x1f4   :  { %v882_v43 = vmul.f32 0.1, %v846_v31  ;;  %vm874_vm10 = vcmp.ge.f32.partialorder %v846_v31, 0.0  ;;  %v762_v57 = vpop.f32.mrf.mxu0  ;;  %v851_v59 = vpop.f32.mrf.mxu1 }
 0x1f5   :  { %v2921_v42 = vsel %vm872_vm9, %v757_v30, %v880_v39  ;;  %vm873_vm11 = vcmp.ge.f32.partialorder %v759_v40, 0.0  ;;  %v881_v45 = vmul.f32 0.1, %v759_v40  ;;  %v883_v47 = vmul.f32 0.1, %v848_v41 }
 0x1f6   :  { %1144 = vrot.lane.b32.xlu1 %v2921_v42, %s2322_s28  ;;  %v2927_v48 = vsel %vm874_vm10, %v846_v31, %v882_v43  ;;  %vm875_vm12 = vcmp.ge.f32.partialorder %v848_v41, 0.0  ;;  %v763_v60 = vadd.f32 %v762_v57, %v663_v58  ;;  %v764_v61 = vpop.f32.mrf.mxu0  ;;  %v852_v12 = vadd.f32 %v851_v59, %v663_v58  ;;  %v853_v14 = vpop.f32.mrf.mxu1 }
 0x1f7   :  { %v2925_v46 = vsel %vm873_vm11, %v759_v40, %v881_v45  ;;  %v2933_v56 = vsel %vm875_vm12, %v848_v41, %v883_v47  ;;  %v765_v62 = vadd.f32 %v764_v61, %v663_v58  ;;  %v854_v31 = vadd.f32 %v853_v14, %v663_v58  ;;  %v1225_v47 = vld [vmem:[#allocation9 + $0x8] sm:$0xff] }
 0x1f8   :  { %1148 = vrot.lane.b32.xlu0 %v2925_v46, %s2322_s28  ;;  %v884_v4 = vmul.f32 0.1, %v763_v60  ;;  %vm876_vm13 = vcmp.ge.f32.partialorder %v763_v60, 0.0  ;;  %v886_v32 = vmul.f32 0.1, %v852_v12  ;;  %vm878_vm15 = vcmp.ge.f32.partialorder %v852_v12, 0.0  ;;  %2177 = vmatprep.mubr.msk.f32.mxu0 %vm665_vm0, %v1225_v47 }
 0x1f9   :  { %v885_v30 = vmul.f32 0.1, %v765_v62  ;;  %vm877_vm14 = vcmp.ge.f32.partialorder %v765_v62, 0.0  ;;  %v887_v40 = vmul.f32 0.1, %v854_v31  ;;  %vm879_vm9 = vcmp.ge.f32.partialorder %v854_v31, 0.0  ;;  %2181 = vmatprep.mubr.msk.f32.mxu1 %vm665_vm0, %v1225_v47 }
 0x1fa   :  { %1152 = vrot.lane.b32.xlu1 %v2927_v48, %s2322_s28  ;;  %v2987_v5 = vsel %vm876_vm13, %v763_v60, %v884_v4  ;;  %v2995_v41 = vsel %vm878_vm15, %v852_v12, %v886_v32  ;;  %v1306_v4 = vld [vmem:[%s3926_s5 + $0x10] sm:$0xff] }
 0x1fb   :  { %v2993_v39 = vsel %vm877_vm14, %v765_v62, %v885_v30  ;;  %v3001_v43 = vsel %vm879_vm9, %v854_v31, %v887_v40  ;;  %v1307_v62 = vld [vmem:[%s3926_s5 + $0x18] sm:$0xff] }
 0x1fc   :  { %1156 = vrot.lane.b32.xlu0 %v2933_v56, %s2322_s28 }
 0x1fe   :  { %1104 = vrot.lane.b32.xlu1 %v2921_v42, %s2323_s19 }
 0x200   :  { %1108 = vrot.lane.b32.xlu0 %v2925_v46, %s2323_s19 }
 0x202   :  { %1112 = vrot.lane.b32.xlu1 %v2927_v48, %s2323_s19 }
 0x204   :  { %1116 = vrot.lane.b32.xlu0 %v2933_v56, %s2323_s19 }
 0x206   :  { %1064 = vrot.lane.b32.xlu1 %v2921_v42, %s2324_s1 }
 0x208   :  { %1068 = vrot.lane.b32.xlu0 %v2925_v46, %s2324_s1 }
 0x20a   :  { %1072 = vrot.lane.b32.xlu1 %v2927_v48, %s2324_s1 }
 0x20c   :  { %1076 = vrot.lane.b32.xlu0 %v2933_v56, %s2324_s1 }
 0x20e   :  { %1016 = vrot.lane.b32.xlu1 %v2921_v42, %s2325_s2 }
 0x210   :  { %1020 = vrot.lane.b32.xlu0 %v2925_v46, %s2325_s2 }
 0x212   :  { %1024 = vrot.lane.b32.xlu1 %v2927_v48, %s2325_s2 }
 0x214   :  { %1028 = vrot.lane.b32.xlu0 %v2933_v56, %s2325_s2 }
 0x216   :  { %976 = vrot.lane.b32.xlu1 %v2921_v42, %s2326_s20 }
 0x218   :  { %980 = vrot.lane.b32.xlu0 %v2925_v46, %s2326_s20 }
 0x21a   :  { %984 = vrot.lane.b32.xlu1 %v2927_v48, %s2326_s20 }
 0x21c   :  { %988 = vrot.lane.b32.xlu0 %v2933_v56, %s2326_s20 }
 0x21e   :  { %936 = vrot.lane.b32.xlu1 %v2921_v42, %s2318_s9 }
 0x220   :  { %940 = vrot.lane.b32.xlu0 %v2925_v46, %s2318_s9 }
 0x222   :  { %944 = vrot.lane.b32.xlu1 %v2927_v48, %s2318_s9 }
 0x224   :  { %948 = vrot.lane.b32.xlu0 %v2933_v56, %s2318_s9 }
 0x226   :  { %896 = vrot.lane.b32.xlu1 %v2921_v42, %s2327_s21 }
 0x228   :  { %900 = vrot.lane.b32.xlu0 %v2925_v46, %s2327_s21 }
 0x22a   :  { %904 = vrot.lane.b32.xlu1 %v2927_v48, %s2327_s21 }
 0x22c   :  { %908 = vrot.lane.b32.xlu0 %v2933_v56, %s2327_s21 }
 0x22e   :  { %1184 = vrot.lane.b32.xlu1 %v2921_v42, %s2328_s22 }
 0x230   :  { %1188 = vrot.lane.b32.xlu0 %v2925_v46, %s2328_s22 }
 0x232   :  { %1146 = vrot.lane.b32.xlu1 %v2987_v5, %s2322_s28 }
 0x234   :  { %1150 = vrot.lane.b32.xlu0 %v2993_v39, %s2322_s28 }
 0x236   :  { %1154 = vrot.lane.b32.xlu1 %v2995_v41, %s2322_s28 }
 0x238   :  { %1158 = vrot.lane.b32.xlu0 %v3001_v43, %s2322_s28 }
 0x23a   :  { %1106 = vrot.lane.b32.xlu1 %v2987_v5, %s2323_s19 }
 0x23c   :  { %1110 = vrot.lane.b32.xlu0 %v2993_v39, %s2323_s19 }
 0x23e   :  { %1114 = vrot.lane.b32.xlu1 %v2995_v41, %s2323_s19 }
 0x240   :  { %1118 = vrot.lane.b32.xlu0 %v3001_v43, %s2323_s19 }
 0x242   :  { %1066 = vrot.lane.b32.xlu1 %v2987_v5, %s2324_s1 }
 0x244   :  { %1070 = vrot.lane.b32.xlu0 %v2993_v39, %s2324_s1 }
 0x246   :  { %1074 = vrot.lane.b32.xlu1 %v2995_v41, %s2324_s1 }
 0x248   :  { %1078 = vrot.lane.b32.xlu0 %v3001_v43, %s2324_s1 }
 0x24a   :  { %1018 = vrot.lane.b32.xlu1 %v2987_v5, %s2325_s2 }
 0x24c   :  { %1022 = vrot.lane.b32.xlu0 %v2993_v39, %s2325_s2 }
 0x24e   :  { %1026 = vrot.lane.b32.xlu1 %v2995_v41, %s2325_s2 }
 0x250   :  { %1030 = vrot.lane.b32.xlu0 %v3001_v43, %s2325_s2 }
 0x252   :  { %978 = vrot.lane.b32.xlu1 %v2987_v5, %s2326_s20 }
 0x254   :  { %982 = vrot.lane.b32.xlu0 %v2993_v39, %s2326_s20 }
 0x256   :  { %986 = vrot.lane.b32.xlu1 %v2995_v41, %s2326_s20 }
 0x258   :  { %990 = vrot.lane.b32.xlu0 %v3001_v43, %s2326_s20 }
 0x25a   :  { %938 = vrot.lane.b32.xlu1 %v2987_v5, %s2318_s9 }
 0x25c   :  { %942 = vrot.lane.b32.xlu0 %v2993_v39, %s2318_s9 }
 0x25e   :  { %946 = vrot.lane.b32.xlu1 %v2995_v41, %s2318_s9 }
 0x260   :  { %950 = vrot.lane.b32.xlu0 %v3001_v43, %s2318_s9 }
 0x262   :  { %898 = vrot.lane.b32.xlu1 %v2987_v5, %s2327_s21 }
 0x264   :  { %902 = vrot.lane.b32.xlu0 %v2993_v39, %s2327_s21 }
 0x266   :  { %906 = vrot.lane.b32.xlu1 %v2995_v41, %s2327_s21 }
 0x268   :  { %v1145_v45 = vpop.permute.xlu1 %1144  ;;  %910 = vrot.lane.b32.xlu0 %v3001_v43, %s2327_s21 }
 0x26a   :  { %1186 = vrot.lane.b32.xlu1 %v2987_v5, %s2328_s22  ;;  %v1149_v57 = vpop.permute.xlu0 %1148 }
 0x26c   :  { %v1153_v58 = vpop.permute.xlu1 %1152  ;;  %1190 = vrot.lane.b32.xlu0 %v2993_v39, %s2328_s22 }
 0x26e   :  { %1194 = vrot.lane.b32.xlu1 %v2995_v41, %s2328_s22  ;;  %v1157_v59 = vpop.permute.xlu0 %1156 }
 0x270   :  { %v3061_v60 = vpop.permute.xlu1 %1104  ;;  %1198 = vrot.lane.b32.xlu0 %v3001_v43, %s2328_s22 }
 0x272   :  { %1192 = vrot.lane.b32.xlu1 %v2927_v48, %s2328_s22  ;;  %v3067_v61 = vpop.permute.xlu0 %1108 }
 0x274   :  { %v3072_v12 = vpop.permute.xlu1 %1112  ;;  %1196 = vrot.lane.b32.xlu0 %v2933_v56, %s2328_s22 }
 0x276   :  { %1325 = vperm.xlu1 %2207, %v1307_v62   ;;  %v3079_v14 = vpop.permute.xlu0 %1116 }
 0x278   :  { %v3081_v30 = vpop.permute.xlu1 %1064  ;;  %1320 = vperm.xlu0 %2206, %v1306_v4  }
 0x27a   :  { %v3083_v31 = vpop.permute.xlu0 %1068 }
 0x27c   :  { %v3085_v32 = vpop.permute.xlu1 %1072 }
 0x27e   :  { %v3087_v40 = vpop.permute.xlu0 %1076 }
 0x280   :  { %v3089_v47 = vpop.permute.xlu1 %1016 }
 0x282   :  { %v3091_v17 = vpop.permute.xlu0 %1020 }
 0x284   :  { %v3093_v62 = vpop.permute.xlu1 %1024 }
 0x286   :  { %v3095_v28 = vpop.permute.xlu0 %1028 }
 0x288   :  { %v3097_v13 = vpop.permute.xlu1 %976 }
 0x28a   :  { %v3099_v2 = vpop.permute.xlu0 %980 }
 0x28c   :  { %v3101_v3 = vpop.permute.xlu1 %984 }
 0x28e   :  { %v3103_v4 = vpop.permute.xlu0 %988 }
 0x290   :  { %v3105_v8 = vpop.permute.xlu1 %936 }
 0x291   :  { %4007 = vst [vmem:[#allocation38_spill] sm:$0xff] %v3105_v8 }
 0x292   :  { %v3107_v9 = vpop.permute.xlu0 %940 }
 0x293   :  { %4008 = vst [vmem:[#allocation39_spill] sm:$0xff] %v3107_v9 }
 0x294   :  { %v3109_v63 = vpop.permute.xlu1 %944 }
 0x295   :  { %4009 = vst [vmem:[#allocation40_spill] sm:$0xff] %v3109_v63  ;;  %v1162_v63 = vsel %vm463_vm1, %v1149_v57, %v1153_v58 }
 0x296   :  { %v3111_v15 = vpop.permute.xlu0 %948 }
 0x297   :  { %4010 = vst [vmem:[#allocation41_spill] sm:$0xff] %v3111_v15 }
 0x298   :  { %v3113_v18 = vpop.permute.xlu1 %896 }
 0x299   :  { %4011 = vst [vmem:[#allocation42_spill] sm:$0xff] %v3113_v18 }
 0x29a   :  { %v3115_v27 = vpop.permute.xlu0 %900 }
 0x29b   :  { %4012 = vst [vmem:[#allocation43_spill] sm:$0xff] %v3115_v27  ;;  %v1166_v27 = vsel %vm463_vm1, %v1157_v59, %v1145_v45 }
 0x29c   :  { %v3117_v11 = vpop.permute.xlu1 %904 }
 0x29d   :  { %4013 = vst [vmem:[#allocation44_spill] sm:$0xff] %v3117_v11  ;;  %v1164_v11 = vsel %vm463_vm1, %v1145_v45, %v1149_v57 }
 0x29e   :  { %v3119_v1 = vpop.permute.xlu0 %908  ;;  %v1168_v57 = vmul.f32 %v1164_v11, %v2580_v21 }
 0x29f   :  { %4014 = vst [vmem:[#allocation45_spill] sm:$0xff] %v3119_v1 }
 0x2a0   :  { %v3121_v0 = vpop.permute.xlu1 %1184 }
 0x2a1   :  { %4015 = vst [vmem:[#allocation46_spill] sm:$0xff] %v3121_v0 }
 0x2a2   :  { %v3123_v29 = vpop.permute.xlu0 %1188 }
 0x2a3   :  { %4016 = vst [vmem:[#allocation47_spill] sm:$0xff] %v3123_v29 }
 0x2a4   :  { %v1147_v26 = vpop.permute.xlu1 %1146 }
 0x2a6   :  { %v1151_v38 = vpop.permute.xlu0 %1150 }
 0x2a7   :  { %v1165_v33 = vsel %vm463_vm1, %v1147_v26, %v1151_v38 }
 0x2a8   :  { %v1155_v7 = vpop.permute.xlu1 %1154  ;;  %v1172_v0 = vmul.f32 %v1165_v33, %v2580_v21 }
 0x2a9   :  { %v1163_v18 = vsel %vm463_vm1, %v1151_v38, %v1155_v7  ;;  %v1169_v38 = vmul.f32 %v1162_v63, %v2574_v19 }
 0x2aa   :  { %v1173_v1 = vmul.f32 %v1163_v18, %v2574_v19  ;;  %v1159_v29 = vpop.permute.xlu0 %1158  ;;  %v1160_v18 = vsel %vm463_vm1, %v1153_v58, %v1157_v59  ;;  %v1126_v58 = vsel %vm406_vm2, %v3079_v14, %v3061_v60 }
 0x2ab   :  { %v1161_v15 = vsel %vm463_vm1, %v1155_v7, %v1159_v29  ;;  %v1167_v8 = vsel %vm463_vm1, %v1159_v29, %v1147_v26  ;;  %v1171_v7 = vmul.f32 %v1166_v27, %v2577_v20  ;;  %v1170_v26 = vmul.f32 %v1160_v18, %v2583_v22 }
 0x2ac   :  { %1340 = vmatprep.subr.mxu0 %v1173_v1  ;;  %v1107_v9 = vpop.permute.xlu1 %1106  ;;  %v1174_v33 = vmul.f32 %v1161_v15, %v2583_v22  ;;  %v1175_v45 = vmul.f32 %v1167_v8, %v2577_v20  ;;  %v1124_v15 = vsel %vm406_vm2, %v3061_v60, %v3067_v61  ;;  %v1120_v18 = vsel %vm406_vm2, %v3072_v12, %v3079_v14 }
 0x2ad   :  { %1341 = vmatpush1.msra.mxu0 %v1172_v0  ;;  %v1122_v0 = vsel %vm406_vm2, %v3067_v61, %v3072_v12  ;;  %v1082_v12 = vsel %vm349_vm3, %v3083_v31, %v3085_v32 }
 0x2ae   :  { %1342 = vmatprep.subr.mxu0 %v1169_v38  ;;  %v1111_v6 = vpop.permute.xlu0 %1110  ;;  %1429 = vmatprep.subr.mxu1 %v1175_v45  ;;  %v1129_v61 = vmul.f32 %v1122_v0, %v2628_v51 }
 0x2af   :  { %1343 = vmatpush1.msra.mxu0 %v1168_v57  ;;  %v1125_v29 = vsel %vm406_vm2, %v1107_v9, %v1111_v6  ;;  %1430 = vmatpush1.msra.mxu1 %v1174_v33  ;;  %v1128_v57 = vmul.f32 %v1124_v15, %v2637_v54 }
 0x2b0   :  { %v1115_v1 = vpop.permute.xlu1 %1114  ;;  %1431 = vmatprep.subr.mxu1 %v1171_v7  ;;  %v1132_v63 = vmul.f32 %v1125_v29, %v2637_v54  ;;  %v1130_v7 = vmul.f32 %v1120_v18, %v2634_v53 }
 0x2b1   :  { %v1123_v11 = vsel %vm406_vm2, %v1111_v6, %v1115_v1  ;;  %1432 = vmatpush1.msra.mxu1 %v1170_v26 }
 0x2b2   :  { %v1133_v27 = vmul.f32 %v1123_v11, %v2628_v51  ;;  %v1119_v8 = vpop.permute.xlu0 %1118 }
 0x2b3   :  { %v1121_v59 = vsel %vm406_vm2, %v1115_v1, %v1119_v8  ;;  %v1127_v6 = vsel %vm406_vm2, %v1119_v8, %v1107_v9  ;;  %v1131_v9 = vmul.f32 %v1126_v58, %v2631_v52  ;;  %v1084_v1 = vsel %vm349_vm3, %v3081_v30, %v3083_v31 }
 0x2b4   :  { %1344 = vmatprep.subr.mxu0 %v1133_v27  ;;  %v1067_v38 = vpop.permute.xlu1 %1066  ;;  %v1134_v33 = vmul.f32 %v1121_v59, %v2634_v53  ;;  %v1135_v60 = vmul.f32 %v1127_v6, %v2631_v52  ;;  %v1086_v27 = vsel %vm349_vm3, %v3087_v40, %v3081_v30  ;;  %v1089_v31 = vmul.f32 %v1082_v12, %v2666_v34 }
 0x2b5   :  { %1345 = vmatpush1.msra.mxu0 %v1132_v63  ;;  %v1088_v59 = vmul.f32 %v1084_v1, %v2675_v37  ;;  %v1080_v6 = vsel %vm349_vm3, %v3085_v32, %v3087_v40 }
 0x2b6   :  { %1346 = vmatprep.subr.mxu0 %v1129_v61  ;;  %v1071_v45 = vpop.permute.xlu0 %1070  ;;  %1433 = vmatprep.subr.mxu1 %v1135_v60  ;;  %v1090_v18 = vmul.f32 %v1080_v6, %v2672_v36  ;;  %v1036_v60 = vsel %vm284_vm4, %v3089_v47, %v3091_v17 }
 0x2b7   :  { %1347 = vmatpush1.msra.mxu0 %v1128_v57  ;;  %v1085_v26 = vsel %vm349_vm3, %v1067_v38, %v1071_v45  ;;  %1434 = vmatpush1.msra.mxu1 %v1134_v33 }
 0x2b8   :  { %v1075_v29 = vpop.permute.xlu1 %1074  ;;  %1435 = vmatprep.subr.mxu1 %v1131_v9  ;;  %v1092_v11 = vmul.f32 %v1085_v26, %v2675_v37 }
 0x2b9   :  { %v1083_v14 = vsel %vm349_vm3, %v1071_v45, %v1075_v29  ;;  %1436 = vmatpush1.msra.mxu1 %v1130_v7  ;;  %v1032_v45 = vsel %vm284_vm4, %v3093_v62, %v3095_v28 }
 0x2ba   :  { %v1093_v0 = vmul.f32 %v1083_v14, %v2666_v34  ;;  %v1079_v15 = vpop.permute.xlu0 %1078  ;;  %v1043_v14 = vmul.f32 %v1032_v45, %v2714_v24 }
 0x2bb   :  { %v1081_v63 = vsel %vm349_vm3, %v1075_v29, %v1079_v15  ;;  %v1087_v8 = vsel %vm349_vm3, %v1079_v15, %v1067_v38  ;;  %v1091_v38 = vmul.f32 %v1086_v27, %v2669_v35  ;;  %v992_v15 = vsel %vm227_vm5, %v3101_v3, %v3103_v4 }
 0x2bc   :  { %1348 = vmatprep.subr.mxu0 %v1093_v0  ;;  %v1019_v58 = vpop.permute.xlu1 %1018  ;;  %v1094_v61 = vmul.f32 %v1081_v63, %v2672_v36  ;;  %v1095_v30 = vmul.f32 %v1087_v8, %v2669_v35  ;;  %v998_v27 = vsel %vm227_vm5, %v3103_v4, %v3097_v13 }
 0x2bd   :  { %1349 = vmatpush1.msra.mxu0 %v1092_v11  ;;  %v1000_v4 = vmul.f32 %v998_v27, %v2756_v49  ;;  %v4025_v27 = vld [vmem:[#allocation22_spill] sm:$0xff] }
 0x2be   :  { %1350 = vmatprep.subr.mxu0 %v1089_v31  ;;  %v1023_v57 = vpop.permute.xlu0 %1022  ;;  %1437 = vmatprep.subr.mxu1 %v1095_v30  ;;  %v994_v31 = vsel %vm227_vm5, %v3099_v2, %v3101_v3 }
 0x2bf   :  { %1351 = vmatpush1.msra.mxu0 %v1088_v59  ;;  %v1037_v33 = vsel %vm284_vm4, %v1019_v58, %v1023_v57  ;;  %1438 = vmatpush1.msra.mxu1 %v1094_v61 }
 0x2c0   :  { %1352 = vmatprep.subr.mxu0 %v2993_v39  ;;  %v1027_v32 = vpop.permute.xlu1 %1026  ;;  %1439 = vmatprep.subr.mxu1 %v1091_v38  ;;  %v1045_v40 = vmul.f32 %v1037_v33, %v2704_v16  ;;  %v1002_v38 = vmul.f32 %v994_v31, %v2762_v55 }
 0x2c1   :  { %1353 = vmatpush1.msra.mxu0 %v2987_v5  ;;  %1440 = vmatpush1.msra.mxu1 %v1090_v18  ;;  %v1035_v39 = vsel %vm284_vm4, %v1023_v57, %v1027_v32  ;;  %v1003_v57 = vmul.f32 %v992_v15, %v2759_v50  ;;  %v4017_v18 = vld [vmem:[#allocation18_spill] sm:$0xff] }
 0x2c2   :  { %1354 = vmatprep.subr.mxu0 %v2925_v46  ;;  %v1031_v9 = vpop.permute.xlu0 %1030  ;;  %1441 = vmatprep.subr.mxu1 %v3001_v43  ;;  %v1038_v46 = vsel %vm284_vm4, %v3095_v28, %v3089_v47  ;;  %v1046_v28 = vmul.f32 %v1035_v39, %v2717_v25  ;;  %v1041_v47 = vmul.f32 %v1036_v60, %v2704_v16 }
 0x2c3   :  { %1355 = vmatpush1.msra.mxu0 %v2921_v42  ;;  %v1033_v5 = vsel %vm284_vm4, %v1027_v32, %v1031_v9  ;;  %v1039_v7 = vsel %vm284_vm4, %v1031_v9, %v1019_v58  ;;  %1442 = vmatpush1.msra.mxu1 %v2995_v41  ;;  %v1034_v42 = vsel %vm284_vm4, %v3091_v17, %v3093_v62  ;;  %v4018_v32 = vld [vmem:[#allocation39_spill] sm:$0xff]  ;;  %v4020_v9 = vld [vmem:[#allocation41_spill] sm:$0xff] }
 0x2c4   :  { %1356 = vmatprep.subr.mxu0 %v1045_v40  ;;  %v979_v26 = vpop.permute.xlu1 %978  ;;  %v1044_v43 = vmul.f32 %v1039_v7, %v2711_v23  ;;  %v1047_v29 = vmul.f32 %v1033_v5, %v2714_v24  ;;  %1443 = vmatprep.subr.mxu1 %v2933_v56  ;;  %v1040_v41 = vmul.f32 %v1038_v46, %v2711_v23  ;;  %v4019_v40 = vld [vmem:[#allocation38_spill] sm:$0xff]  ;;  %v4021_v46 = vld [vmem:[#allocation40_spill] sm:$0xff] }
 0x2c5   :  { %1444 = vmatpush1.msra.mxu1 %v2927_v48  ;;  %v1042_v17 = vmul.f32 %v1034_v42, %v2717_v25  ;;  %v996_v48 = vsel %vm227_vm5, %v3097_v13, %v3099_v2  ;;  %v956_v60 = vsel %vm170_vm6, %v4019_v40, %v4018_v32  ;;  %v952_v5 = vsel %vm170_vm6, %v4021_v46, %v4020_v9 }
 0x2c6   :  { %v983_v12 = vpop.permute.xlu0 %982  ;;  %1357 = vmatpush1.msra.mxu0 %v1044_v43  ;;  %1445 = vmatprep.subr.mxu1 %v1047_v29  ;;  %v1001_v13 = vmul.f32 %v996_v48, %v2750_v44  ;;  %v958_v7 = vsel %vm170_vm6, %v4020_v9, %v4019_v40  ;;  %v954_v29 = vsel %vm170_vm6, %v4018_v32, %v4021_v46  ;;  %v4031_v40 = vld [vmem:[#allocation24_spill] sm:$0xff] }
 0x2c7   :  { %v997_v62 = vsel %vm227_vm5, %v979_v26, %v983_v12  ;;  %1358 = vmatprep.subr.mxu0 %v1041_v47  ;;  %1446 = vmatpush1.msra.mxu1 %v1046_v28  ;;  %v4022_v28 = vld [vmem:[#allocation19_spill] sm:$0xff] }
 0x2c8   :  { %v987_v56 = vpop.permute.xlu1 %986  ;;  %v1005_v1 = vmul.f32 %v997_v62, %v2750_v44  ;;  %1359 = vmatpush1.msra.mxu0 %v1040_v41  ;;  %1447 = vmatprep.subr.mxu1 %v1043_v14  ;;  %v4023_v41 = vld [vmem:[#allocation20_spill] sm:$0xff]  ;;  %v4024_v14 = vld [vmem:[#allocation21_spill] sm:$0xff]  ;;  %v961_v62 = vmul.f32 %v956_v60, %v4017_v18 }
 0x2c9   :  { %1448 = vmatpush1.msra.mxu1 %v1042_v17  ;;  %v995_v0 = vsel %vm227_vm5, %v983_v12, %v987_v56  ;;  %v963_v48 = vmul.f32 %v952_v5, %v4023_v41 }
 0x2ca   :  { %v991_v11 = vpop.permute.xlu0 %990  ;;  %1360 = vmatprep.subr.mxu0 %v1005_v1  ;;  %v1006_v61 = vmul.f32 %v995_v0, %v2762_v55  ;;  %v962_v0 = vmul.f32 %v954_v29, %v4024_v14 }
 0x2cb   :  { %v993_v63 = vsel %vm227_vm5, %v987_v56, %v991_v11  ;;  %v999_v8 = vsel %vm227_vm5, %v991_v11, %v979_v26  ;;  %v960_v56 = vmul.f32 %v958_v7, %v4022_v28 }
 0x2cc   :  { %v939_v58 = vpop.permute.xlu1 %938  ;;  %v1004_v59 = vmul.f32 %v999_v8, %v2756_v49  ;;  %v1007_v6 = vmul.f32 %v993_v63, %v2759_v50  ;;  %v4026_v8 = vld [vmem:[#allocation43_spill] sm:$0xff] }
 0x2ce   :  { %v943_v30 = vpop.permute.xlu0 %942  ;;  %1361 = vmatpush1.msra.mxu0 %v1004_v59  ;;  %1449 = vmatprep.subr.mxu1 %v1007_v6 }
 0x2cf   :  { %v957_v3 = vsel %vm170_vm6, %v939_v58, %v943_v30  ;;  %1362 = vmatprep.subr.mxu0 %v1001_v13  ;;  %1450 = vmatpush1.msra.mxu1 %v1006_v61  ;;  %v4028_v61 = vld [vmem:[#allocation45_spill] sm:$0xff]  ;;  %v4029_v13 = vld [vmem:[#allocation44_spill] sm:$0xff] }
 0x2d0   :  { %v947_v2 = vpop.permute.xlu1 %946  ;;  %v965_v33 = vmul.f32 %v957_v3, %v4017_v18  ;;  %1363 = vmatpush1.msra.mxu0 %v1000_v4  ;;  %1451 = vmatprep.subr.mxu1 %v1003_v57  ;;  %v912_v4 = vsel %vm113_vm7, %v4029_v13, %v4028_v61 }
 0x2d1   :  { %1452 = vmatpush1.msra.mxu1 %v1002_v38  ;;  %v955_v45 = vsel %vm170_vm6, %v943_v30, %v947_v2  ;;  %v923_v7 = vmul.f32 %v912_v4, %v4031_v40 }
 0x2d2   :  { %v951_v39 = vpop.permute.xlu0 %950  ;;  %1364 = vmatprep.subr.mxu0 %v965_v33  ;;  %v966_v17 = vmul.f32 %v955_v45, %v4024_v14  ;;  %v4030_v33 = vld [vmem:[#allocation23_spill] sm:$0xff]  ;;  %v4032_v45 = vld [vmem:[#allocation25_spill] sm:$0xff] }
 0x2d3   :  { %v953_v26 = vsel %vm170_vm6, %v947_v2, %v951_v39  ;;  %v959_v42 = vsel %vm170_vm6, %v951_v39, %v939_v58  ;;  %v4027_v58 = vld [vmem:[#allocation42_spill] sm:$0xff]  ;;  %v914_v2 = vsel %vm113_vm7, %v4026_v8, %v4029_v13 }
 0x2d4   :  { %v899_v43 = vpop.permute.xlu1 %898  ;;  %v964_v47 = vmul.f32 %v959_v42, %v4022_v28  ;;  %v967_v12 = vmul.f32 %v953_v26, %v4023_v41  ;;  %v916_v31 = vsel %vm113_vm7, %v4027_v58, %v4026_v8  ;;  %v918_v30 = vsel %vm113_vm7, %v4028_v61, %v4027_v58  ;;  %v4037_v8 = vld [vmem:[#allocation28_spill] sm:$0xff] }
 0x2d5   :  { %v921_v9 = vmul.f32 %v916_v31, %v4025_v27  ;;  %v920_v46 = vmul.f32 %v918_v30, %v4030_v33  ;;  %v922_v26 = vmul.f32 %v914_v2, %v4032_v45  ;;  %v4038_v31 = vld [vmem:[#allocation27_spill] sm:$0xff]  ;;  %v1224_v30 = vld [vmem:[#allocation9] sm:$0xff] }
 0x2d6   :  { %v903_v1 = vpop.permute.xlu0 %902  ;;  %1365 = vmatpush1.msra.mxu0 %v964_v47  ;;  %1453 = vmatprep.subr.mxu1 %v967_v12  ;;  %v4033_v47 = vld [vmem:[#allocation26_spill] sm:$0xff] }
 0x2d7   :  { %v917_v11 = vsel %vm113_vm7, %v899_v43, %v903_v1  ;;  %1366 = vmatprep.subr.mxu0 %v961_v62  ;;  %1454 = vmatpush1.msra.mxu1 %v966_v17  ;;  %v4034_v17 = vld [vmem:[#allocation29_spill] sm:$0xff] }
 0x2d8   :  { %v907_v15 = vpop.permute.xlu1 %906  ;;  %v925_v63 = vmul.f32 %v917_v11, %v4025_v27  ;;  %1367 = vmatpush1.msra.mxu0 %v960_v56  ;;  %1455 = vmatprep.subr.mxu1 %v963_v48  ;;  %v4036_v48 = vld [vmem:[#allocation46_spill] sm:$0xff] }
 0x2d9   :  { %1456 = vmatpush1.msra.mxu1 %v962_v0  ;;  %v915_v59 = vsel %vm113_vm7, %v903_v1, %v907_v15  ;;  %v4035_v1 = vld [vmem:[#allocation47_spill] sm:$0xff] }
 0x2da   :  { %v911_v6 = vpop.permute.xlu0 %910  ;;  %1368 = vmatprep.subr.mxu0 %v925_v63  ;;  %v926_v39 = vmul.f32 %v915_v59, %v4032_v45  ;;  %v1204_v0 = vsel %vm520_vm8, %v4036_v48, %v4035_v1 }
 0x2db   :  { %v913_v57 = vsel %vm113_vm7, %v907_v15, %v911_v6  ;;  %v919_v38 = vsel %vm113_vm7, %v911_v6, %v899_v43  ;;  %v1208_v13 = vmul.f32 %v1204_v0, %v4034_v17 }
 0x2dc   :  { %v1187_v3 = vpop.permute.xlu1 %1186  ;;  %v924_v32 = vmul.f32 %v919_v38, %v4030_v33  ;;  %v927_v60 = vmul.f32 %v913_v57, %v4031_v40 }
 0x2de   :  { %v1191_v5 = vpop.permute.xlu0 %1190  ;;  %1369 = vmatpush1.msra.mxu0 %v924_v32  ;;  %1457 = vmatprep.subr.mxu1 %v927_v60  ;;  %v1226_v60 = vld [vmem:[#allocation9 + $0x10] sm:$0xff] }
 0x2df   :  { %v1205_v42 = vsel %vm520_vm8, %v1187_v3, %v1191_v5  ;;  %1370 = vmatprep.subr.mxu0 %v921_v9  ;;  %1458 = vmatpush1.msra.mxu1 %v926_v39  ;;  %v1229_v39 = vld [vmem:[#allocation9 + $0x28] sm:$0xff]  ;;  %v1228_v9 = vld [vmem:[#allocation9 + $0x20] sm:$0xff] }
 0x2e0   :  { %v1195_v43 = vpop.permute.xlu1 %1194  ;;  %1371 = vmatpush1.msra.mxu0 %v920_v46  ;;  %1459 = vmatprep.subr.mxu1 %v923_v7  ;;  %v1212_v62 = vmul.f32 %v1205_v42, %v4034_v17  ;;  %v1231_v46 = vld [vmem:[#allocation9 + $0x38] sm:$0xff] }
 0x2e1   :  { %v1203_v29 = vsel %vm520_vm8, %v1191_v5, %v1195_v43  ;;  %1460 = vmatpush1.msra.mxu1 %v922_v26  ;;  %v1230_v5 = vld [vmem:[#allocation9 + $0x30] sm:$0xff] }
 0x2e2   :  { %v1213_v12 = vmul.f32 %v1203_v29, %v4033_v47  ;;  %v1199_v56 = vpop.permute.xlu0 %1198 }
 0x2e3   :  { %v1201_v11 = vsel %vm520_vm8, %v1195_v43, %v1199_v56  ;;  %v1207_v15 = vsel %vm520_vm8, %v1199_v56, %v1187_v3  ;;  %v1227_v3 = vld [vmem:[#allocation9 + $0x18] sm:$0xff] }
 0x2e4   :  { %1400 = vmatprep.subr.mxu0 %v1213_v12  ;;  %v1193_v63 = vpop.permute.xlu1 %1192  ;;  %v1214_v58 = vmul.f32 %v1201_v11, %v4037_v8  ;;  %v1215_v59 = vmul.f32 %v1207_v15, %v4038_v31 }
 0x2e5   :  { %v1202_v6 = vsel %vm520_vm8, %v4035_v1, %v1193_v63  ;;  %1401 = vmatpush2.msra.mxu0 %v1212_v62 }
 0x2e6   :  { %v1209_v61 = vmul.f32 %v1202_v6, %v4033_v47  ;;  %v1197_v4 = vpop.permute.xlu0 %1196  ;;  %1489 = vmatprep.subr.mxu1 %v1215_v59 }
 0x2e7   :  { %v1200_v57 = vsel %vm520_vm8, %v1193_v63, %v1197_v4  ;;  %v1206_v38 = vsel %vm520_vm8, %v1197_v4, %v4036_v48  ;;  %1490 = vmatpush2.msra.mxu1 %v1214_v58 }
 0x2e8   :  { %1402 = vmatprep.subr.mxu0 %v1209_v61  ;;  %v1210_v2 = vmul.f32 %v1200_v57, %v4037_v8  ;;  %v1211_v32 = vmul.f32 %v1206_v38, %v4038_v31 }
 0x2e9   :  { %1403 = vmatpush2.msra.mxu0 %v1208_v13 }
 0x2ea   :  { %1405 = vmatmul.mubr.f32.vlgmr.msra.gmra.mxu0 %v1224_v30  ;;  %1491 = vmatprep.subr.mxu1 %v1211_v32 }
 0x2eb   :  { %2178 = vmatprep.mubr.msk.f32.mxu0 %vm665_vm0, %v1227_v3  ;;  %1492 = vmatpush2.msra.mxu1 %v1210_v2 }
 0x2ec   :  { %1494 = vmatmul.mubr.f32.vlgmr.msra.gmra.mxu1 %v1224_v30 }
 0x2ed   :  { %2182 = vmatprep.mubr.msk.f32.mxu1 %vm665_vm0, %v1227_v3 }
 0x2ee   :  { %1411 = vmatmul.mubr.f32.gmra.mxu0 %v1226_v60 }
 0x2ef   :  { %2179 = vmatprep.mubr.msk.f32.mxu0 %vm665_vm0, %v1229_v39 }
 0x2f0   :  { %1500 = vmatmul.mubr.f32.gmra.mxu1 %v1226_v60 }
 0x2f1   :  { %2183 = vmatprep.mubr.msk.f32.mxu1 %vm665_vm0, %v1229_v39  ;;  %v1326_v60 = vpop.permute.xlu1 %1325 }
 0x2f2   :  { %1417 = vmatmul.mubr.f32.gmra.mxu0 %v1228_v9 }
 0x2f3   :  { %2180 = vmatprep.mubr.msk.f32.mxu0 %vm665_vm0, %v1231_v46  ;;  %v1321_v56 = vpop.permute.xlu0 %1320 }
 0x2f4   :  { %1506 = vmatmul.mubr.f32.gmra.mxu1 %v1228_v9 }
 0x2f5   :  { %2184 = vmatprep.mubr.msk.f32.mxu1 %vm665_vm0, %v1231_v46 }
 0x2f6   :  { %1423 = vmatmul.mubr.f32.gmra.mxu0 %v1230_v5 }
 0x2f8   :  { %1512 = vmatmul.mubr.f32.gmra.mxu1 %v1230_v5 }
 0x3aa   :  { %v3383_v7 = vpop.f32.mrf.mxu0 }
 0x3ab   :  { %4039 = vst [vmem:[#allocation39_spill] sm:$0xff] %v3383_v7 }
 0x3ac   :  { %v3385_v26 = vpop.f32.mrf.mxu0  ;;  %v3387_v42 = vpop.f32.mrf.mxu1 }
 0x3ad   :  { %4040 = vst [vmem:[#allocation38_spill] sm:$0xff] %v3385_v26  ;;  %4041 = vst [vmem:[#allocation41_spill] sm:$0xff] %v3387_v42 }
 0x3ae   :  { %v3389_v43 = vpop.f32.mrf.mxu0  ;;  %v3391_v29 = vpop.f32.mrf.mxu1 }
 0x3af   :  { %4042 = vst [vmem:[#allocation40_spill] sm:$0xff] %v3389_v43  ;;  %4043 = vst [vmem:[#allocation43_spill] sm:$0xff] %v3391_v29 }
 0x3b0   :  { %v3393_v12 = vpop.f32.mrf.mxu0  ;;  %v3395_v62 = vpop.f32.mrf.mxu1 }
 0x3b1   :  { %4044 = vst [vmem:[#allocation42_spill] sm:$0xff] %v3393_v12  ;;  %4045 = vst [vmem:[#allocation45_spill] sm:$0xff] %v3395_v62  ;;  %v1963_v12 = vld [vmem:[%s3928_s7 + $0x8] sm:$0xff] }
 0x3b2   :  { %v1418_v1 = vpop.f32.mrf.mxu0  ;;  %v3397_v0 = vpop.f32.mrf.mxu1 }
 0x3b3   :  { %v1419_v48 = vadd.f32 %v1418_v1, %v1321_v56  ;;  %4046 = vst [vmem:[#allocation44_spill] sm:$0xff] %v3397_v0 }
 0x3b4   :  { %v1420_v11 = vpop.f32.mrf.mxu0  ;;  %v1507_v58 = vpop.f32.mrf.mxu1 }
 0x3b5   :  { %vm1534_vm10 = vcmp.ge.f32.partialorder %v1419_v48, 0.0  ;;  %v1542_v15 = vmul.f32 0.1, %v1419_v48  ;;  %v1421_v63 = vadd.f32 %v1420_v11, %v1321_v56  ;;  %v1508_v59 = vadd.f32 %v1507_v58, %v1321_v56 }
 0x3b6   :  { %v1509_v13 = vpop.f32.mrf.mxu1  ;;  %v1424_v32 = vpop.f32.mrf.mxu0 }
 0x3b7   :  { %v3399_v6 = vsel %vm1534_vm10, %v1419_v48, %v1542_v15  ;;  %vm1535_vm11 = vcmp.ge.f32.partialorder %v1421_v63, 0.0  ;;  %v1543_v61 = vmul.f32 0.1, %v1421_v63  ;;  %vm1536_vm12 = vcmp.ge.f32.partialorder %v1508_v59, 0.0 }
 0x3b8   :  { %v1544_v4 = vmul.f32 0.1, %v1508_v59  ;;  %v1510_v30 = vadd.f32 %v1509_v13, %v1321_v56  ;;  %1806 = vrot.lane.b32.xlu1 %v3399_v6, %s2322_s28  ;;  %v1426_v39 = vpop.f32.mrf.mxu0  ;;  %v1513_v9 = vpop.f32.mrf.mxu1  ;;  %v1425_v46 = vadd.f32 %v1424_v32, %v1326_v60 }
 0x3b9   :  { %v3403_v57 = vsel %vm1535_vm11, %v1421_v63, %v1543_v61  ;;  %v1427_v5 = vadd.f32 %v1426_v39, %v1326_v60  ;;  %v1514_v48 = vadd.f32 %v1513_v9, %v1326_v60 }
 0x3ba   :  { %vm1537_vm13 = vcmp.ge.f32.partialorder %v1510_v30, 0.0  ;;  %v1545_v38 = vmul.f32 0.1, %v1510_v30  ;;  %1810 = vrot.lane.b32.xlu0 %v3403_v57, %s2322_s28  ;;  %v3407_v3 = vsel %vm1536_vm12, %v1508_v59, %v1544_v4  ;;  %v1515_v56 = vpop.f32.mrf.mxu1  ;;  %v1546_v1 = vmul.f32 0.1, %v1425_v46 }
 0x3bb   :  { %vm1538_vm14 = vcmp.ge.f32.partialorder %v1425_v46, 0.0  ;;  %v1547_v11 = vmul.f32 0.1, %v1427_v5  ;;  %v1516_v15 = vadd.f32 %v1515_v56, %v1326_v60  ;;  %vm1539_vm15 = vcmp.ge.f32.partialorder %v1427_v5, 0.0 }
 0x3bc   :  { %1814 = vrot.lane.b32.xlu1 %v3407_v3, %s2322_s28  ;;  %v3411_v2 = vsel %vm1537_vm13, %v1510_v30, %v1545_v38  ;;  %v3467_v63 = vsel %vm1538_vm14, %v1425_v46, %v1546_v1  ;;  %v1548_v58 = vmul.f32 0.1, %v1514_v48  ;;  %vm1540_vm9 = vcmp.ge.f32.partialorder %v1514_v48, 0.0  ;;  %v1887_v38 = vld [vmem:[#allocation10 + $0x8] sm:$0xff]  ;;  %v641_v1 = vld [vmem:[%s3924_s3] sm:$0xff] }
 0x3bd   :  { %v3471_v59 = vsel %vm1539_vm15, %v1427_v5, %v1547_v11  ;;  %v1549_v61 = vmul.f32 0.1, %v1516_v15  ;;  %vm1541_vm10 = vcmp.ge.f32.partialorder %v1516_v15, 0.0  ;;  %2185 = vmatprep.mubr.msk.f32.mxu0 %vm665_vm0, %v1887_v38  ;;  %2187 = vmatprep.mubr.msk.f32.mxu1 %vm665_vm0, %v1887_v38  ;;  %v642_v11 = vld [vmem:[%s3924_s3 + $0x8] sm:$0xff] }
 0x3be   :  { %1818 = vrot.lane.b32.xlu0 %v3411_v2, %s2322_s28  ;;  %v3475_v13 = vsel %vm1540_vm9, %v1514_v48, %v1548_v58  ;;  %v1304_v58 = vld [vmem:[%s3926_s5] sm:$0xff]  ;;  %v1305_v38 = vld [vmem:[%s3926_s5 + $0x8] sm:$0xff]  ;;  %s2330_s5 = smov [#allocation12]  }
 0x3bf   :  { %v3479_v4 = vsel %vm1541_vm10, %v1516_v15, %v1549_v61 }
 0x3c0   :  { %1766 = vrot.lane.b32.xlu1 %v3399_v6, %s2323_s19 }
 0x3c2   :  { %1770 = vrot.lane.b32.xlu0 %v3403_v57, %s2323_s19 }
 0x3c4   :  { %1774 = vrot.lane.b32.xlu1 %v3407_v3, %s2323_s19 }
 0x3c6   :  { %1778 = vrot.lane.b32.xlu0 %v3411_v2, %s2323_s19 }
 0x3c8   :  { %1726 = vrot.lane.b32.xlu1 %v3399_v6, %s2324_s1 }
 0x3ca   :  { %1730 = vrot.lane.b32.xlu0 %v3403_v57, %s2324_s1 }
 0x3cc   :  { %1734 = vrot.lane.b32.xlu1 %v3407_v3, %s2324_s1 }
 0x3ce   :  { %1738 = vrot.lane.b32.xlu0 %v3411_v2, %s2324_s1 }
 0x3d0   :  { %1678 = vrot.lane.b32.xlu1 %v3399_v6, %s2325_s2 }
 0x3d2   :  { %1682 = vrot.lane.b32.xlu0 %v3403_v57, %s2325_s2 }
 0x3d4   :  { %1686 = vrot.lane.b32.xlu1 %v3407_v3, %s2325_s2 }
 0x3d6   :  { %1690 = vrot.lane.b32.xlu0 %v3411_v2, %s2325_s2 }
 0x3d8   :  { %1638 = vrot.lane.b32.xlu1 %v3399_v6, %s2326_s20 }
 0x3da   :  { %1642 = vrot.lane.b32.xlu0 %v3403_v57, %s2326_s20 }
 0x3dc   :  { %1646 = vrot.lane.b32.xlu1 %v3407_v3, %s2326_s20 }
 0x3de   :  { %1650 = vrot.lane.b32.xlu0 %v3411_v2, %s2326_s20 }
 0x3e0   :  { %1598 = vrot.lane.b32.xlu1 %v3399_v6, %s2318_s9 }
 0x3e2   :  { %1602 = vrot.lane.b32.xlu0 %v3403_v57, %s2318_s9 }
 0x3e4   :  { %1606 = vrot.lane.b32.xlu1 %v3407_v3, %s2318_s9 }
 0x3e6   :  { %1610 = vrot.lane.b32.xlu0 %v3411_v2, %s2318_s9 }
 0x3e8   :  { %1558 = vrot.lane.b32.xlu1 %v3399_v6, %s2327_s21 }
 0x3ea   :  { %1562 = vrot.lane.b32.xlu0 %v3403_v57, %s2327_s21 }
 0x3ec   :  { %1566 = vrot.lane.b32.xlu1 %v3407_v3, %s2327_s21 }
 0x3ee   :  { %1570 = vrot.lane.b32.xlu0 %v3411_v2, %s2327_s21 }
 0x3f0   :  { %1846 = vrot.lane.b32.xlu1 %v3399_v6, %s2328_s22 }
 0x3f2   :  { %1850 = vrot.lane.b32.xlu0 %v3403_v57, %s2328_s22 }
 0x3f4   :  { %1808 = vrot.lane.b32.xlu1 %v3467_v63, %s2322_s28 }
 0x3f6   :  { %1812 = vrot.lane.b32.xlu0 %v3471_v59, %s2322_s28 }
 0x3f8   :  { %1816 = vrot.lane.b32.xlu1 %v3475_v13, %s2322_s28 }
 0x3fa   :  { %1820 = vrot.lane.b32.xlu0 %v3479_v4, %s2322_s28 }
 0x3fc   :  { %1768 = vrot.lane.b32.xlu1 %v3467_v63, %s2323_s19 }
 0x3fe   :  { %1772 = vrot.lane.b32.xlu0 %v3471_v59, %s2323_s19 }
 0x400   :  { %1776 = vrot.lane.b32.xlu1 %v3475_v13, %s2323_s19 }
 0x402   :  { %1780 = vrot.lane.b32.xlu0 %v3479_v4, %s2323_s19 }
 0x404   :  { %1728 = vrot.lane.b32.xlu1 %v3467_v63, %s2324_s1 }
 0x406   :  { %1732 = vrot.lane.b32.xlu0 %v3471_v59, %s2324_s1 }
 0x408   :  { %1736 = vrot.lane.b32.xlu1 %v3475_v13, %s2324_s1 }
 0x40a   :  { %1740 = vrot.lane.b32.xlu0 %v3479_v4, %s2324_s1 }
 0x40c   :  { %1680 = vrot.lane.b32.xlu1 %v3467_v63, %s2325_s2 }
 0x40e   :  { %1684 = vrot.lane.b32.xlu0 %v3471_v59, %s2325_s2 }
 0x410   :  { %1688 = vrot.lane.b32.xlu1 %v3475_v13, %s2325_s2 }
 0x412   :  { %1692 = vrot.lane.b32.xlu0 %v3479_v4, %s2325_s2 }
 0x414   :  { %1640 = vrot.lane.b32.xlu1 %v3467_v63, %s2326_s20 }
 0x416   :  { %1644 = vrot.lane.b32.xlu0 %v3471_v59, %s2326_s20 }
 0x418   :  { %1648 = vrot.lane.b32.xlu1 %v3475_v13, %s2326_s20 }
 0x41a   :  { %1652 = vrot.lane.b32.xlu0 %v3479_v4, %s2326_s20 }
 0x41c   :  { %1600 = vrot.lane.b32.xlu1 %v3467_v63, %s2318_s9 }
 0x41e   :  { %1604 = vrot.lane.b32.xlu0 %v3471_v59, %s2318_s9 }
 0x420   :  { %1608 = vrot.lane.b32.xlu1 %v3475_v13, %s2318_s9 }
 0x422   :  { %1612 = vrot.lane.b32.xlu0 %v3479_v4, %s2318_s9 }
 0x424   :  { %1560 = vrot.lane.b32.xlu1 %v3467_v63, %s2327_s21 }
 0x426   :  { %1564 = vrot.lane.b32.xlu0 %v3471_v59, %s2327_s21 }
 0x428   :  { %1568 = vrot.lane.b32.xlu1 %v3475_v13, %s2327_s21 }
 0x42a   :  { %1572 = vrot.lane.b32.xlu0 %v3479_v4, %s2327_s21  ;;  %v3531_v30 = vpop.permute.xlu1 %1806 }
 0x42c   :  { %v3533_v32 = vpop.permute.xlu0 %1810  ;;  %1848 = vrot.lane.b32.xlu1 %v3467_v63, %s2328_s22 }
 0x42d   :  { %v3542_v60 = vsel %vm463_vm1, %v3531_v30, %v3533_v32 }
 0x42e   :  { %1852 = vrot.lane.b32.xlu0 %v3471_v59, %s2328_s22  ;;  %v3547_v39 = vpop.permute.xlu1 %1814 }
 0x430   :  { %v3549_v9 = vpop.permute.xlu0 %1818  ;;  %1856 = vrot.lane.b32.xlu1 %v3475_v13, %s2328_s22 }
 0x432   :  { %1860 = vrot.lane.b32.xlu0 %v3479_v4, %s2328_s22  ;;  %v3555_v46 = vpop.permute.xlu1 %1766 }
 0x434   :  { %v3557_v5 = vpop.permute.xlu0 %1770  ;;  %1854 = vrot.lane.b32.xlu1 %v3407_v3, %s2328_s22 }
 0x435   :  { %v3565_v56 = vsel %vm406_vm2, %v3555_v46, %v3557_v5 }
 0x436   :  { %1858 = vrot.lane.b32.xlu0 %v3411_v2, %s2328_s22  ;;  %v3572_v48 = vpop.permute.xlu1 %1774 }
 0x438   :  { %v3577_v15 = vpop.permute.xlu0 %1778  ;;  %647 = vperm.xlu1 %2207, %v641_v1   ;;  %v1962_v1 = vld [vmem:[%s3928_s7] sm:$0xff]  ;;  %s2155_s7 = sshll.u32 %s2330_s5, 4  ;;  %s2156_s7 = int_to_ptr.vmem [resolvable:$true] %s2155_s7 }
 0x439   :  { %s2288_s17 = scalar_lea.vmem %s2156_s7, 3072  ;;  %p2293_p7 = scmp.lt.s32.totalorder %s2156_s7, %s2156_s7 }
 0x43a   :  { %652 = vperm.xlu0 %2206, %v642_v11   ;;  %v3582_v61 = vpop.permute.xlu1 %1726  ;;  %p2289_p6 = scmp.ne.s32.totalorder %s2156_s7, %s2288_s17  ;;  %p2294_p8 = scmp.lt.s32.totalorder %s2288_s17, %s2288_s17 }
 0x43c   :  { %v3587_v0 = vpop.permute.xlu0 %1730  ;;  %1310 = vperm.xlu1 %2207, %v1304_v58   ;;  %p2295_p9 = por %p2294_p8, %p2293_p7 }
 0x43d   :  { %v3593_v62 = vsel %vm349_vm3, %v3582_v61, %v3587_v0 }
 0x43e   :  { %1315 = vperm.xlu0 %2206, %v1305_v38   ;;  %v3598_v11 = vpop.permute.xlu1 %1734  ;;  %p2296_p10 = pnand %p2295_p9, %p2289_p6 }
 0x440   :  { %v3603_v43 = vpop.permute.xlu0 %1738  ;;  %1966 = vperm.xlu1 %2207, %v1962_v1  }
 0x442   :  { %1971 = vperm.xlu0 %2206, %v1963_v12   ;;  %v3605_v58 = vpop.permute.xlu1 %1678 }
 0x444   :  { %v1683_v29 = vpop.permute.xlu0 %1682 }
 0x445   :  { %v3610_v42 = vsel %vm284_vm4, %v3605_v58, %v1683_v29 }
 0x446   :  { %v3612_v26 = vpop.permute.xlu1 %1686 }
 0x447   :  { %v3617_v38 = vsel %vm284_vm4, %v1683_v29, %v3612_v26 }
 0x448   :  { %v3619_v7 = vpop.permute.xlu0 %1690 }
 0x44a   :  { %v3621_v31 = vpop.permute.xlu1 %1638 }
 0x44c   :  { %v1643_v12 = vpop.permute.xlu0 %1642 }
 0x44d   :  { %v3626_v1 = vsel %vm227_vm5, %v3621_v31, %v1643_v12 }
 0x44e   :  { %4047 = vst [vmem:[#allocation47_spill] sm:$0xff] %v3626_v1  ;;  %v3628_v8 = vpop.permute.xlu1 %1646 }
 0x44f   :  { %v3633_v17 = vsel %vm227_vm5, %v1643_v12, %v3628_v8 }
 0x450   :  { %4048 = vst [vmem:[#allocation46_spill] sm:$0xff] %v3633_v17  ;;  %v3635_v47 = vpop.permute.xlu0 %1650 }
 0x452   :  { %v3637_v29 = vpop.permute.xlu1 %1598 }
 0x453   :  { %4049 = vst [vmem:[#allocation48_spill] sm:$0xff] %v3637_v29 }
 0x454   :  { %v1603_v45 = vpop.permute.xlu0 %1602 }
 0x455   :  { %v3642_v40 = vsel %vm170_vm6, %v3637_v29, %v1603_v45 }
 0x456   :  { %4050 = vst [vmem:[#allocation49_spill] sm:$0xff] %v3642_v40  ;;  %v3644_v33 = vpop.permute.xlu1 %1606 }
 0x457   :  { %4051 = vst [vmem:[#allocation50_spill] sm:$0xff] %v3644_v33  ;;  %v3649_v27 = vsel %vm170_vm6, %v1603_v45, %v3644_v33 }
 0x458   :  { %4052 = vst [vmem:[#allocation51_spill] sm:$0xff] %v3649_v27  ;;  %v3651_v14 = vpop.permute.xlu0 %1610 }
 0x459   :  { %4053 = vst [vmem:[#allocation52_spill] sm:$0xff] %v3651_v14 }
 0x45a   :  { %v3653_v12 = vpop.permute.xlu1 %1558 }
 0x45b   :  { %4054 = vst [vmem:[#allocation53_spill] sm:$0xff] %v3653_v12 }
 0x45c   :  { %v1563_v41 = vpop.permute.xlu0 %1562 }
 0x45d   :  { %v3658_v28 = vsel %vm113_vm7, %v3653_v12, %v1563_v41 }
 0x45e   :  { %4055 = vst [vmem:[#allocation54_spill] sm:$0xff] %v3658_v28  ;;  %v3660_v18 = vpop.permute.xlu1 %1566  ;;  %v1824_v28 = vsel %vm463_vm1, %v3533_v32, %v3547_v39 }
 0x45f   :  { %4056 = vst [vmem:[#allocation55_spill] sm:$0xff] %v3660_v18  ;;  %v3665_v40 = vsel %vm113_vm7, %v1563_v41, %v3660_v18  ;;  %v1831_v32 = vmul.f32 %v1824_v28, %v2574_v19 }
 0x460   :  { %4057 = vst [vmem:[#allocation56_spill] sm:$0xff] %v3665_v40  ;;  %v3667_v29 = vpop.permute.xlu0 %1570 }
 0x461   :  { %4058 = vst [vmem:[#allocation57_spill] sm:$0xff] %v3667_v29 }
 0x462   :  { %v3669_v45 = vpop.permute.xlu1 %1846 }
 0x463   :  { %4059 = vst [vmem:[#allocation58_spill] sm:$0xff] %v3669_v45  ;;  %v1828_v45 = vsel %vm463_vm1, %v3549_v9, %v3531_v30 }
 0x464   :  { %v3671_v27 = vpop.permute.xlu0 %1850 }
 0x465   :  { %4060 = vst [vmem:[#allocation59_spill] sm:$0xff] %v3671_v27 }
 0x466   :  { %v1809_v33 = vpop.permute.xlu1 %1808 }
 0x468   :  { %v1813_v14 = vpop.permute.xlu0 %1812 }
 0x469   :  { %v1827_v17 = vsel %vm463_vm1, %v1809_v33, %v1813_v14 }
 0x46a   :  { %v1817_v12 = vpop.permute.xlu1 %1816  ;;  %v1834_v27 = vmul.f32 %v1827_v17, %v2580_v21  ;;  %v1830_v17 = vmul.f32 %v3542_v60, %v2580_v21  ;;  %v1784_v21 = vsel %vm406_vm2, %v3557_v5, %v3572_v48  ;;  %v1782_v5 = vsel %vm406_vm2, %v3572_v48, %v3577_v15 }
 0x46b   :  { %v1825_v41 = vsel %vm463_vm1, %v1813_v14, %v1817_v12  ;;  %v1822_v14 = vsel %vm463_vm1, %v3547_v39, %v3549_v9  ;;  %v1791_v9 = vmul.f32 %v1784_v21, %v2628_v51 }
 0x46c   :  { %v1835_v40 = vmul.f32 %v1825_v41, %v2574_v19  ;;  %v1821_v18 = vpop.permute.xlu0 %1820  ;;  %v1832_v19 = vmul.f32 %v1822_v14, %v2583_v22 }
 0x46d   :  { %v1823_v29 = vsel %vm463_vm1, %v1817_v12, %v1821_v18  ;;  %v1829_v55 = vsel %vm463_vm1, %v1821_v18, %v1809_v33  ;;  %v1833_v12 = vmul.f32 %v1828_v45, %v2577_v20  ;;  %v1790_v45 = vmul.f32 %v3565_v56, %v2637_v54 }
 0x46e   :  { %v1836_v41 = vmul.f32 %v1823_v29, %v2583_v22  ;;  %v1837_v1 = vmul.f32 %v1829_v55, %v2577_v20  ;;  %1980 = vmatprep.subr.mxu0 %v1835_v40  ;;  %v1769_v30 = vpop.permute.xlu1 %1768  ;;  %v1788_v22 = vsel %vm406_vm2, %v3577_v15, %v3555_v46 }
 0x46f   :  { %1981 = vmatpush1.msra.mxu0 %v1834_v27 }
 0x470   :  { %v1773_v18 = vpop.permute.xlu0 %1772  ;;  %1982 = vmatprep.subr.mxu0 %v1831_v32  ;;  %2057 = vmatprep.subr.mxu1 %v1837_v1  ;;  %v1793_v32 = vmul.f32 %v1788_v22, %v2631_v52  ;;  %v1704_v22 = vmul.f32 %v3617_v38, %v2717_v25 }
 0x471   :  { %1983 = vmatpush1.msra.mxu0 %v1830_v17  ;;  %2058 = vmatpush1.msra.mxu1 %v1836_v41  ;;  %v1787_v28 = vsel %vm406_vm2, %v1769_v30, %v1773_v18 }
 0x472   :  { %2059 = vmatprep.subr.mxu1 %v1833_v12  ;;  %v1777_v55 = vpop.permute.xlu1 %1776  ;;  %v1794_v40 = vmul.f32 %v1787_v28, %v2637_v54  ;;  %v1744_v54 = vsel %vm349_vm3, %v3587_v0, %v3598_v11 }
 0x473   :  { %v1785_v20 = vsel %vm406_vm2, %v1773_v18, %v1777_v55  ;;  %2060 = vmatpush1.msra.mxu1 %v1832_v19  ;;  %v1751_v12 = vmul.f32 %v1744_v54, %v2666_v34  ;;  %v1742_v18 = vsel %vm349_vm3, %v3598_v11, %v3603_v43  ;;  %v4066_v54 = vld [vmem:[#allocation50_spill] sm:$0xff] }
 0x474   :  { %v1795_v27 = vmul.f32 %v1785_v20, %v2628_v51  ;;  %v1781_v33 = vpop.permute.xlu0 %1780  ;;  %v1792_v51 = vmul.f32 %v1782_v5, %v2634_v53  ;;  %v4061_v5 = vld [vmem:[#allocation47_spill] sm:$0xff] }
 0x475   :  { %v1783_v60 = vsel %vm406_vm2, %v1777_v55, %v1781_v33  ;;  %v1789_v39 = vsel %vm406_vm2, %v1781_v33, %v1769_v30  ;;  %v1750_v55 = vmul.f32 %v3593_v62, %v2675_v37 }
 0x476   :  { %v1796_v1 = vmul.f32 %v1783_v60, %v2634_v53  ;;  %v1797_v29 = vmul.f32 %v1789_v39, %v2631_v52  ;;  %1984 = vmatprep.subr.mxu0 %v1795_v27  ;;  %v1729_v46 = vpop.permute.xlu1 %1728  ;;  %v1748_v53 = vsel %vm349_vm3, %v3603_v43, %v3582_v61 }
 0x477   :  { %1985 = vmatpush1.msra.mxu0 %v1794_v40  ;;  %v1753_v21 = vmul.f32 %v1748_v53, %v2669_v35 }
 0x478   :  { %v1733_v14 = vpop.permute.xlu0 %1732  ;;  %1986 = vmatprep.subr.mxu0 %v1791_v9  ;;  %2061 = vmatprep.subr.mxu1 %v1797_v29 }
 0x479   :  { %1987 = vmatpush1.msra.mxu0 %v1790_v45  ;;  %2062 = vmatpush1.msra.mxu1 %v1796_v1  ;;  %v1747_v48 = vsel %vm349_vm3, %v1729_v46, %v1733_v14  ;;  %v1663_v1 = vmul.f32 %v4061_v5, %v2750_v44  ;;  %v4063_v45 = vld [vmem:[#allocation46_spill] sm:$0xff] }
 0x47a   :  { %2063 = vmatprep.subr.mxu1 %v1793_v32  ;;  %v1737_v15 = vpop.permute.xlu1 %1736  ;;  %v1754_v30 = vmul.f32 %v1747_v48, %v2675_v37 }
 0x47b   :  { %v1745_v52 = vsel %vm349_vm3, %v1733_v14, %v1737_v15  ;;  %2064 = vmatpush1.msra.mxu1 %v1792_v51  ;;  %v4064_v51 = vld [vmem:[#allocation18_spill] sm:$0xff] }
 0x47c   :  { %v1755_v56 = vmul.f32 %v1745_v52, %v2666_v34  ;;  %v1741_v41 = vpop.permute.xlu0 %1740  ;;  %v1752_v34 = vmul.f32 %v1742_v18, %v2672_v36 }
 0x47d   :  { %v1743_v17 = vsel %vm349_vm3, %v1737_v15, %v1741_v41  ;;  %v1749_v0 = vsel %vm349_vm3, %v1741_v41, %v1729_v46  ;;  %v4065_v15 = vld [vmem:[#allocation52_spill] sm:$0xff] }
 0x47e   :  { %v1756_v19 = vmul.f32 %v1743_v17, %v2672_v36  ;;  %v1757_v28 = vmul.f32 %v1749_v0, %v2669_v35  ;;  %1988 = vmatprep.subr.mxu0 %v1755_v56  ;;  %v1681_v61 = vpop.permute.xlu1 %1680  ;;  %v1694_v35 = vsel %vm284_vm4, %v3612_v26, %v3619_v7  ;;  %v1614_v52 = vsel %vm170_vm6, %v4066_v54, %v4065_v15  ;;  %v4067_v56 = vld [vmem:[#allocation48_spill] sm:$0xff]  ;;  %v4068_v17 = vld [vmem:[#allocation19_spill] sm:$0xff] }
 0x47f   :  { %1989 = vmatpush1.msra.mxu0 %v1754_v30  ;;  %v1620_v41 = vsel %vm170_vm6, %v4065_v15, %v4067_v56  ;;  %v4087_v15 = vld [vmem:[#allocation27_spill] sm:$0xff] }
 0x480   :  { %v1685_v20 = vpop.permute.xlu0 %1684  ;;  %1990 = vmatprep.subr.mxu0 %v1751_v12  ;;  %2065 = vmatprep.subr.mxu1 %v1757_v28  ;;  %v4069_v12 = vld [vmem:[#allocation20_spill] sm:$0xff]  ;;  %v4070_v28 = vld [vmem:[#allocation49_spill] sm:$0xff] }
 0x481   :  { %v1699_v43 = vsel %vm284_vm4, %v1681_v61, %v1685_v20  ;;  %1991 = vmatpush1.msra.mxu0 %v1750_v55  ;;  %2066 = vmatpush1.msra.mxu1 %v1756_v19  ;;  %v4071_v55 = vld [vmem:[#allocation21_spill] sm:$0xff] }
 0x482   :  { %1992 = vmatprep.subr.mxu0 %v3471_v59  ;;  %2067 = vmatprep.subr.mxu1 %v1753_v21  ;;  %v1689_v11 = vpop.permute.xlu1 %1688  ;;  %v1707_v37 = vmul.f32 %v1699_v43, %v2704_v16 }
 0x483   :  { %1993 = vmatpush1.msra.mxu0 %v3467_v63  ;;  %2068 = vmatpush1.msra.mxu1 %v1752_v34  ;;  %v1697_v36 = vsel %vm284_vm4, %v1685_v20, %v1689_v11  ;;  %v1700_v63 = vsel %vm284_vm4, %v3619_v7, %v3605_v58  ;;  %v1703_v7 = vmul.f32 %v3610_v42, %v2704_v16 }
 0x484   :  { %v1693_v62 = vpop.permute.xlu0 %1692  ;;  %1994 = vmatprep.subr.mxu0 %v3403_v57  ;;  %2069 = vmatprep.subr.mxu1 %v3479_v4  ;;  %v1708_v58 = vmul.f32 %v1697_v36, %v2717_v25  ;;  %v1702_v33 = vmul.f32 %v1700_v63, %v2711_v23  ;;  %v1654_v25 = vsel %vm227_vm5, %v3628_v8, %v3635_v47  ;;  %v4062_v8 = vld [vmem:[#allocation17_spill] sm:$0xff]  ;;  %v4073_v36 = vld [vmem:[#allocation22_spill] sm:$0xff] }
 0x485   :  { %v1695_v59 = vsel %vm284_vm4, %v1689_v11, %v1693_v62  ;;  %v1701_v26 = vsel %vm284_vm4, %v1693_v62, %v1681_v61  ;;  %1995 = vmatpush1.msra.mxu0 %v3399_v6  ;;  %2070 = vmatpush1.msra.mxu1 %v3475_v13  ;;  %v1705_v6 = vmul.f32 %v1694_v35, %v2714_v24  ;;  %v4072_v11 = vld [vmem:[#allocation51_spill] sm:$0xff] }
 0x486   :  { %v1706_v27 = vmul.f32 %v1701_v26, %v2711_v23  ;;  %v1709_v57 = vmul.f32 %v1695_v59, %v2714_v24  ;;  %1996 = vmatprep.subr.mxu0 %v1707_v37  ;;  %2071 = vmatprep.subr.mxu1 %v3411_v2  ;;  %v1641_v4 = vpop.permute.xlu1 %1640  ;;  %v1664_v32 = vmul.f32 %v4063_v45, %v4062_v8 }
 0x487   :  { %2072 = vmatpush1.msra.mxu1 %v3407_v3  ;;  %v1660_v3 = vsel %vm227_vm5, %v3635_v47, %v3621_v31  ;;  %v1665_v47 = vmul.f32 %v1654_v25, %v2759_v50  ;;  %v1623_v61 = vmul.f32 %v4070_v28, %v4064_v51  ;;  %v1622_v20 = vmul.f32 %v1620_v41, %v4068_v17  ;;  %v4080_v25 = vld [vmem:[#allocation25_spill] sm:$0xff]  ;;  %v1889_v28 = vld [vmem:[#allocation10 + $0x18] sm:$0xff] }
 0x488   :  { %v1645_v13 = vpop.permute.xlu0 %1644  ;;  %1997 = vmatpush1.msra.mxu0 %v1706_v27  ;;  %2073 = vmatprep.subr.mxu1 %v1709_v57  ;;  %v1662_v46 = vmul.f32 %v1660_v3, %v2756_v49  ;;  %v1625_v34 = vmul.f32 %v1614_v52, %v4069_v12  ;;  %v1624_v35 = vmul.f32 %v4072_v11, %v4071_v55  ;;  %v4074_v27 = vld [vmem:[#allocation57_spill] sm:$0xff]  ;;  %v4075_v57 = vld [vmem:[#allocation55_spill] sm:$0xff] }
 0x489   :  { %v1659_v2 = vsel %vm227_vm5, %v1641_v4, %v1645_v13  ;;  %1998 = vmatprep.subr.mxu0 %v1703_v7  ;;  %2074 = vmatpush1.msra.mxu1 %v1708_v58  ;;  %v4076_v7 = vld [vmem:[#allocation53_spill] sm:$0xff] }
 0x48a   :  { %v1667_v16 = vmul.f32 %v1659_v2, %v2750_v44  ;;  %1999 = vmatpush1.msra.mxu0 %v1702_v33  ;;  %2075 = vmatprep.subr.mxu1 %v1705_v6  ;;  %v1649_v42 = vpop.permute.xlu1 %1648  ;;  %v1580_v58 = vsel %vm113_vm7, %v4074_v27, %v4076_v7  ;;  %v4078_v2 = vld [vmem:[#allocation24_spill] sm:$0xff] }
 0x48b   :  { %2076 = vmatpush1.msra.mxu1 %v1704_v22  ;;  %v1657_v23 = vsel %vm227_vm5, %v1645_v13, %v1649_v42  ;;  %v4077_v13 = vld [vmem:[#allocation23_spill] sm:$0xff] }
 0x48c   :  { %v1653_v24 = vpop.permute.xlu0 %1652  ;;  %2000 = vmatprep.subr.mxu0 %v1667_v16  ;;  %v1668_v29 = vmul.f32 %v1657_v23, %v4062_v8  ;;  %v4079_v23 = vld [vmem:[#allocation54_spill] sm:$0xff] }
 0x48d   :  { %v1655_v38 = vsel %vm227_vm5, %v1649_v42, %v1653_v24  ;;  %v1661_v40 = vsel %vm227_vm5, %v1653_v24, %v1641_v4  ;;  %v1574_v4 = vsel %vm113_vm7, %v4075_v57, %v4074_v27  ;;  %v1583_v24 = vmul.f32 %v4079_v23, %v4073_v36  ;;  %v4092_v27 = vld [vmem:[#allocation34_spill] sm:$0xff] }
 0x48e   :  { %v1666_v60 = vmul.f32 %v1661_v40, %v2756_v49  ;;  %v1669_v39 = vmul.f32 %v1655_v38, %v2759_v50  ;;  %v1601_v9 = vpop.permute.xlu1 %1600  ;;  %v1582_v38 = vmul.f32 %v1580_v58, %v4077_v13  ;;  %v1585_v40 = vmul.f32 %v1574_v4, %v4078_v2  ;;  %v4093_v4 = vld [vmem:[#allocation36_spill] sm:$0xff]  ;;  %v4094_v58 = vld [vmem:[#allocation35_spill] sm:$0xff] }
 0x490   :  { %v1605_v31 = vpop.permute.xlu0 %1604  ;;  %2001 = vmatpush1.msra.mxu0 %v1666_v60  ;;  %2077 = vmatprep.subr.mxu1 %v1669_v39  ;;  %v4081_v39 = vld [vmem:[#allocation56_spill] sm:$0xff] }
 0x491   :  { %v1619_v14 = vsel %vm170_vm6, %v1601_v9, %v1605_v31  ;;  %2002 = vmatprep.subr.mxu0 %v1663_v1  ;;  %2078 = vmatpush1.msra.mxu1 %v1668_v29  ;;  %v4082_v29 = vld [vmem:[#allocation26_spill] sm:$0xff] }
 0x492   :  { %v1627_v48 = vmul.f32 %v1619_v14, %v4064_v51  ;;  %2003 = vmatpush1.msra.mxu0 %v1662_v46  ;;  %2079 = vmatprep.subr.mxu1 %v1665_v47  ;;  %v1609_v44 = vpop.permute.xlu1 %1608  ;;  %v4084_v51 = vld [vmem:[#allocation59_spill] sm:$0xff] }
 0x493   :  { %2080 = vmatpush1.msra.mxu1 %v1664_v32  ;;  %v1617_v49 = vsel %vm170_vm6, %v1605_v31, %v1609_v44  ;;  %v4083_v31 = vld [vmem:[#allocation29_spill] sm:$0xff] }
 0x494   :  { %v1613_v50 = vpop.permute.xlu0 %1612  ;;  %2004 = vmatprep.subr.mxu0 %v1627_v48  ;;  %v1628_v21 = vmul.f32 %v1617_v49, %v4071_v55  ;;  %v4085_v48 = vld [vmem:[#allocation58_spill] sm:$0xff]  ;;  %v4086_v49 = vld [vmem:[#allocation28_spill] sm:$0xff] }
 0x495   :  { %v1615_v53 = vsel %vm170_vm6, %v1609_v44, %v1613_v50  ;;  %v1621_v30 = vsel %vm170_vm6, %v1613_v50, %v1601_v9  ;;  %v1584_v9 = vmul.f32 %v4081_v39, %v4080_v25  ;;  %v1866_v44 = vsel %vm520_vm8, %v4085_v48, %v4084_v51  ;;  %v4088_v55 = vld [vmem:[#allocation30_spill] sm:$0xff] }
 0x496   :  { %v1626_v0 = vmul.f32 %v1621_v30, %v4068_v17  ;;  %v1629_v18 = vmul.f32 %v1615_v53, %v4069_v12  ;;  %v1561_v19 = vpop.permute.xlu1 %1560  ;;  %v1870_v30 = vmul.f32 %v1866_v44, %v4083_v31  ;;  %v1886_v12 = vld [vmem:[#allocation10] sm:$0xff] }
 0x498   :  { %v1565_v43 = vpop.permute.xlu0 %1564  ;;  %2005 = vmatpush1.msra.mxu0 %v1626_v0  ;;  %2081 = vmatprep.subr.mxu1 %v1629_v18 }
 0x499   :  { %v1579_v37 = vsel %vm113_vm7, %v1561_v19, %v1565_v43  ;;  %2006 = vmatprep.subr.mxu0 %v1623_v61  ;;  %2082 = vmatpush1.msra.mxu1 %v1628_v21  ;;  %v1888_v61 = vld [vmem:[#allocation10 + $0x10] sm:$0xff] }
 0x49a   :  { %v1587_v62 = vmul.f32 %v1579_v37, %v4073_v36  ;;  %2007 = vmatpush1.msra.mxu0 %v1622_v20  ;;  %2083 = vmatprep.subr.mxu1 %v1625_v34  ;;  %v1569_v63 = vpop.permute.xlu1 %1568  ;;  %v4089_v20 = vld [vmem:[#allocation32_spill] sm:$0xff] }
 0x49b   :  { %2084 = vmatpush1.msra.mxu1 %v1624_v35  ;;  %v1577_v59 = vsel %vm113_vm7, %v1565_v43, %v1569_v63  ;;  %v4090_v43 = vld [vmem:[#allocation31_spill] sm:$0xff]  ;;  %v4091_v35 = vld [vmem:[#allocation33_spill] sm:$0xff] }
 0x49c   :  { %v1573_v26 = vpop.permute.xlu0 %1572  ;;  %2008 = vmatprep.subr.mxu0 %v1587_v62  ;;  %v1588_v3 = vmul.f32 %v1577_v59, %v4080_v25 }
 0x49d   :  { %v1575_v33 = vsel %vm113_vm7, %v1569_v63, %v1573_v26  ;;  %v1581_v6 = vsel %vm113_vm7, %v1573_v26, %v1561_v19 }
 0x49e   :  { %v1586_v22 = vmul.f32 %v1581_v6, %v4077_v13  ;;  %v1589_v16 = vmul.f32 %v1575_v33, %v4078_v2  ;;  %v1849_v42 = vpop.permute.xlu1 %1848  ;;  %v4095_v6 = vld [vmem:[#allocation37_spill] sm:$0xff]  ;;  %v4096_v2 = vld [vmem:[#allocation39_spill] sm:$0xff] }
 0x4a0   :  { %v1853_v60 = vpop.permute.xlu0 %1852  ;;  %2009 = vmatpush1.msra.mxu0 %v1586_v22  ;;  %2085 = vmatprep.subr.mxu1 %v1589_v16 }
 0x4a1   :  { %2010 = vmatprep.subr.mxu0 %v1583_v24  ;;  %2086 = vmatpush1.msra.mxu1 %v1588_v3  ;;  %v1867_v5 = vsel %vm520_vm8, %v1849_v42, %v1853_v60  ;;  %v4098_v24 = vld [vmem:[#allocation41_spill] sm:$0xff]  ;;  %v4099_v3 = vld [vmem:[#allocation43_spill] sm:$0xff] }
 0x4a2   :  { %2011 = vmatpush1.msra.mxu0 %v1582_v38  ;;  %2087 = vmatprep.subr.mxu1 %v1585_v40  ;;  %v1857_v1 = vpop.permute.xlu1 %1856  ;;  %v1874_v45 = vmul.f32 %v1867_v5, %v4083_v31 }
 0x4a3   :  { %v1865_v8 = vsel %vm520_vm8, %v1853_v60, %v1857_v1  ;;  %2088 = vmatpush1.msra.mxu1 %v1584_v9 }
 0x4a4   :  { %v1875_v46 = vmul.f32 %v1865_v8, %v4082_v29  ;;  %v1861_v47 = vpop.permute.xlu0 %1860 }
 0x4a5   :  { %v1863_v32 = vsel %vm520_vm8, %v1857_v1, %v1861_v47  ;;  %v1869_v14 = vsel %vm520_vm8, %v1861_v47, %v1849_v42  ;;  %v4097_v42 = vld [vmem:[#allocation38_spill] sm:$0xff]  ;;  %v4100_v47 = vld [vmem:[#allocation40_spill] sm:$0xff] }
 0x4a6   :  { %v1876_v50 = vmul.f32 %v1863_v32, %v4086_v49  ;;  %v1877_v54 = vmul.f32 %v1869_v14, %v4087_v15  ;;  %2040 = vmatprep.subr.mxu0 %v1875_v46  ;;  %v1855_v52 = vpop.permute.xlu1 %1854  ;;  %v4102_v14 = vld [vmem:[#allocation45_spill] sm:$0xff] }
 0x4a7   :  { %v1864_v56 = vsel %vm520_vm8, %v4084_v51, %v1855_v52  ;;  %2041 = vmatpush2.msra.mxu0 %v1874_v45  ;;  %v4101_v45 = vld [vmem:[#allocation42_spill] sm:$0xff] }
 0x4a8   :  { %v1871_v41 = vmul.f32 %v1864_v56, %v4082_v29  ;;  %v1859_v53 = vpop.permute.xlu0 %1858  ;;  %2117 = vmatprep.subr.mxu1 %v1877_v54 }
 0x4a9   :  { %v1862_v17 = vsel %vm520_vm8, %v1855_v52, %v1859_v53  ;;  %v1868_v0 = vsel %vm520_vm8, %v1859_v53, %v4085_v48  ;;  %2118 = vmatpush2.msra.mxu1 %v1876_v50  ;;  %v4103_v48 = vld [vmem:[#allocation44_spill] sm:$0xff] }
 0x4aa   :  { %v1872_v18 = vmul.f32 %v1862_v17, %v4086_v49  ;;  %v1873_v19 = vmul.f32 %v1868_v0, %v4087_v15  ;;  %2042 = vmatprep.subr.mxu0 %v1871_v41 }
 0x4ab   :  { %2043 = vmatpush2.msra.mxu0 %v1870_v30 }
 0x4ac   :  { %2045 = vmatmul.mubr.f32.vlgmr.msra.gmra.mxu0 %v1886_v12  ;;  %2119 = vmatprep.subr.mxu1 %v1873_v19 }
 0x4ad   :  { %2120 = vmatpush2.msra.mxu1 %v1872_v18  ;;  %2186 = vmatprep.mubr.msk.f32.mxu0 %vm665_vm0, %v1889_v28 }
 0x4ae   :  { %2122 = vmatmul.mubr.f32.vlgmr.msra.gmra.mxu1 %v1886_v12 }
 0x4af   :  { %2188 = vmatprep.mubr.msk.f32.mxu1 %vm665_vm0, %v1889_v28 }
 0x4b0   :  { %2051 = vmatmul.mubr.f32.gmra.mxu0 %v1888_v61 }
 0x4b2   :  { %2128 = vmatmul.mubr.f32.gmra.mxu1 %v1888_v61 }
 0x4b3   :  { %v648_v10 = vpop.permute.xlu1 %647 }
 0x4b4   :  { %v745_v21 = vadd.f32 %v4088_v55, %v648_v10  ;;  %v747_v34 = vadd.f32 %v4089_v20, %v648_v10  ;;  %v834_v11 = vadd.f32 %v4090_v43, %v648_v10  ;;  %v836_v37 = vadd.f32 %v4091_v35, %v648_v10 }
 0x4b5   :  { %v653_v36 = vpop.permute.xlu0 %652 }
 0x4b6   :  { %v856_v62 = vmax.f32 %v745_v21, 0.0  ;;  %v857_v63 = vmax.f32 %v747_v34, 0.0  ;;  %v858_v59 = vmax.f32 %v834_v11, 0.0  ;;  %v859_v26 = vmax.f32 %v836_v37, 0.0 }
 0x4b7   :  { %v751_v57 = vadd.f32 %v4092_v27, %v653_v36  ;;  %v753_v7 = vadd.f32 %v4093_v4, %v653_v36  ;;  %v840_v33 = vadd.f32 %v4094_v58, %v653_v36  ;;  %v842_v13 = vadd.f32 %v4095_v6, %v653_v36  ;;  %v1311_v22 = vpop.permute.xlu1 %1310 }
 0x4b8   :  { %864 = vst [vmem:[#allocation12] sm:$0xff] %v856_v62  ;;  %865 = vst [vmem:[#allocation12 + $0x8] sm:$0xff] %v857_v63  ;;  %v1407_v16 = vadd.f32 %v4096_v2, %v1311_v22  ;;  %v1409_v23 = vadd.f32 %v4097_v42, %v1311_v22  ;;  %v1496_v25 = vadd.f32 %v4098_v24, %v1311_v22 }
 0x4b9   :  { %866 = vst [vmem:[#allocation12 + $0x10] sm:$0xff] %v858_v59  ;;  %867 = vst [vmem:[#allocation12 + $0x18] sm:$0xff] %v859_v26  ;;  %v1498_v38 = vadd.f32 %v4099_v3, %v1311_v22  ;;  %v860_v40 = vmax.f32 %v751_v57, 0.0  ;;  %v861_v60 = vmax.f32 %v753_v7, 0.0  ;;  %v862_v39 = vmax.f32 %v840_v33, 0.0  ;;  %v1316_v5 = vpop.permute.xlu0 %1315 }
 0x4ba   :  { %v863_v9 = vmax.f32 %v842_v13, 0.0  ;;  %v1518_v1 = vmax.f32 %v1407_v16, 0.0  ;;  %v1519_v8 = vmax.f32 %v1409_v23, 0.0  ;;  %v1520_v29 = vmax.f32 %v1496_v25, 0.0 }
 0x4bb   :  { %v1521_v46 = vmax.f32 %v1498_v38, 0.0  ;;  %868 = vst [vmem:[#allocation12 + $0x20] sm:$0xff] %v860_v40  ;;  %869 = vst [vmem:[#allocation12 + $0x28] sm:$0xff] %v861_v60  ;;  %v1413_v31 = vadd.f32 %v4100_v47, %v1316_v5  ;;  %v1415_v32 = vadd.f32 %v4101_v45, %v1316_v5  ;;  %v1502_v51 = vadd.f32 %v4102_v14, %v1316_v5  ;;  %v1967_v52 = vpop.permute.xlu1 %1966 }
 0x4bc   :  { %870 = vst [vmem:[#allocation12 + $0x30] sm:$0xff] %v862_v39  ;;  %871 = vst [vmem:[#allocation12 + $0x38] sm:$0xff] %v863_v9  ;;  %v1504_v44 = vadd.f32 %v4103_v48, %v1316_v5 }
 0x4bd   :  { %1526 = vst [vmem:[#allocation12 + $0x40] sm:$0xff] %v1518_v1  ;;  %1527 = vst [vmem:[#allocation12 + $0x48] sm:$0xff] %v1519_v8  ;;  %v1522_v49 = vmax.f32 %v1413_v31, 0.0  ;;  %v1523_v50 = vmax.f32 %v1415_v32, 0.0  ;;  %v1524_v15 = vmax.f32 %v1502_v51, 0.0  ;;  %v1972_v17 = vpop.permute.xlu0 %1971 }
 0x4be   :  { %1528 = vst [vmem:[#allocation12 + $0x50] sm:$0xff] %v1520_v29  ;;  %1529 = vst [vmem:[#allocation12 + $0x58] sm:$0xff] %v1521_v46  ;;  %v1525_v54 = vmax.f32 %v1504_v44, 0.0 }
 0x4bf   :  { %1530 = vst [vmem:[#allocation12 + $0x60] sm:$0xff] %v1522_v49  ;;  %1531 = vst [vmem:[#allocation12 + $0x68] sm:$0xff] %v1523_v50 }
 0x4c0   :  { %1532 = vst [vmem:[#allocation12 + $0x70] sm:$0xff] %v1524_v15  ;;  %1533 = vst [vmem:[#allocation12 + $0x78] sm:$0xff] %v1525_v54 }
 0x56c   :  { %v2046_v56 = vpop.f32.mrf.mxu0 }
 0x56d   :  { %v2047_v41 = vadd.f32 %v2046_v56, %v1967_v52 }
 0x56e   :  { %v2048_v53 = vpop.f32.mrf.mxu0  ;;  %v2123_v30 = vpop.f32.mrf.mxu1 }
 0x56f   :  { %v2134_v0 = vmax.f32 %v2047_v41, 0.0  ;;  %v2049_v12 = vadd.f32 %v2048_v53, %v1967_v52  ;;  %v2124_v18 = vadd.f32 %v2123_v30, %v1967_v52 }
 0x570   :  { %v2052_v19 = vpop.f32.mrf.mxu0  ;;  %v2125_v28 = vpop.f32.mrf.mxu1 }
 0x571   :  { %2142 = vst [vmem:[#allocation12 + $0x80] sm:$0xff] %v2134_v0  ;;  %v2135_v61 = vmax.f32 %v2049_v12, 0.0  ;;  %v2136_v10 = vmax.f32 %v2124_v18, 0.0  ;;  %v2053_v55 = vadd.f32 %v2052_v19, %v1972_v17  ;;  %v2126_v21 = vadd.f32 %v2125_v28, %v1967_v52 }
 0x572   :  { %v2054_v20 = vpop.f32.mrf.mxu0  ;;  %v2129_v34 = vpop.f32.mrf.mxu1 }
 0x573   :  { %2143 = vst [vmem:[#allocation12 + $0x88] sm:$0xff] %v2135_v61  ;;  %2144 = vst [vmem:[#allocation12 + $0x90] sm:$0xff] %v2136_v10  ;;  %v2138_v43 = vmax.f32 %v2053_v55, 0.0  ;;  %v2137_v11 = vmax.f32 %v2126_v21, 0.0  ;;  %v2055_v35 = vadd.f32 %v2054_v20, %v1972_v17  ;;  %v2130_v37 = vadd.f32 %v2129_v34, %v1972_v17 }
 0x574   :  { %v2131_v36 = vpop.f32.mrf.mxu1 }
 0x575   :  { %2146 = vst [vmem:[#allocation12 + $0xa0] sm:$0xff] %v2138_v43  ;;  %2145 = vst [vmem:[#allocation12 + $0x98] sm:$0xff] %v2137_v11  ;;  %v2139_v62 = vmax.f32 %v2055_v35, 0.0  ;;  %v2140_v63 = vmax.f32 %v2130_v37, 0.0  ;;  %v2132_v59 = vadd.f32 %v2131_v36, %v1972_v17 }
 0x577   :  { %2147 = vst [vmem:[#allocation12 + $0xa8] sm:$0xff] %v2139_v62  ;;  %2148 = vst [vmem:[#allocation12 + $0xb0] sm:$0xff] %v2140_v63  ;;  %v2141_v26 = vmax.f32 %v2132_v59, 0.0 }
 0x579   :  { %2149 = vst [vmem:[#allocation12 + $0xb8] sm:$0xff] %v2141_v26 }
 0x57a   :  { %2299 = shalt.err (!%p2296_p10)
}
 0x57b   :  { %s2331_s18 = smov 512   ;;  %s2332_s19 = smov 32  }
 0x57c   :  { %2161 = dma.vmem_to_hbm [thread:$0]  %s2156_s7, 3072, %s3929_s8, [#allocation6], %s2331_s18, %s2331_s18, %s2332_s19  }
 0x57d   :  { %2314 = dma.done.wait [#allocation6], 3072  }
 0x57e   :  { %2315 = vsyncadd [#allocation6], 4294964224 }
 0x57f   :  { %2165 = vsyncpa [#allocation5], 1 }
 0x580   :  { %2166 = vsyncpa [#allocation8], 1 }
 0x581   :  { %2167 = vsyncpa [#allocation11], 1 }
 0x582   :  { %2168 = vsyncpa [#allocation6], 1 }

</bundles_post_ra>
